<compile_context>
chip_gen: v6e
topology: v6e:2x2x1
jax: 0.10.0
libtpu: 0.0.40
codegen_flags: <defaults>
</compile_context>

<pallas_src>
import functools

import jax
import jax.numpy as jnp
from jax import lax
from jax.experimental import pallas as pl
from jax.experimental.pallas import tpu as pltpu


def _dw_dilated_conv_kernel(x_ref, w_ref, o_ref, pad_ref, *, k, d, p):
    """Depthwise (groups == channels) k x k conv, dilation d, stride 1.

    x_ref:   (1, H, W, C)     input tile (one image, NHWC)
    w_ref:   (k, k, C)        per-channel filter taps
    o_ref:   (1, H, W, C)     output tile
    pad_ref: (H+2p, W+2p, C)  VMEM zero-padded staging scratch
    """
    _, H, W, C = x_ref.shape
    Wp = W + 2 * p

    # Zero only the halo strips; the interior is overwritten below every step.
    if p > 0:
        pad_ref[:p, :, :] = jnp.zeros((p, Wp, C), jnp.float32)
        pad_ref[p + H:, :, :] = jnp.zeros((p, Wp, C), jnp.float32)
        pad_ref[p:p + H, :p, :] = jnp.zeros((H, p, C), jnp.float32)
        pad_ref[p:p + H, p + W:, :] = jnp.zeros((H, p, C), jnp.float32)
    pad_ref[p:p + H, p:p + W, :] = x_ref[0].astype(jnp.float32)

    w = w_ref[...]                                          # (k, k, C)
    acc = jnp.zeros((H, W, C), jnp.float32)
    for kw in range(k):
        # One W-shifted slab per kw (sublane shift), reused for all kh taps.
        xs = pad_ref[:, kw * d: kw * d + W, :]              # (H+2p, W, C)
        for kh in range(k):
            tap = xs[kh * d: kh * d + H, :, :]              # cheap outer-dim slice
            acc = acc + tap * w[kh, kw:kw + 1, :]           # (1, C) lane broadcast
    o_ref[...] = acc.reshape(1, H, W, C).astype(o_ref.dtype)


def channel_wise_dilated_conv(x_nchw, weight, *, stride=1, d=1):
    """Forward of ChannelWiseDilatedConv.

    x_nchw: (N, nIn, H, W) float; weight: (nOut, 1, k, k), nOut % nIn == 0.
    Returns (N, nOut, ceil(H/stride), ceil(W/stride)).
    """
    N, nIn, H, W = x_nchw.shape
    nOut, _, k, k2 = weight.shape
    assert k == k2 and nOut % nIn == 0
    mult = nOut // nIn
    pad = ((k - 1) // 2) * d

    x = jnp.transpose(x_nchw, (0, 2, 3, 1)).astype(jnp.float32)      # NHWC
    if mult > 1:
        # groups=nIn, nOut=mult*nIn: output channel o reads input channel o//mult.
        x = jnp.repeat(x, mult, axis=-1)
    w = jnp.transpose(weight[:, 0], (1, 2, 0)).astype(jnp.float32)   # (k, k, nOut)

    kernel = functools.partial(_dw_dilated_conv_kernel, k=k, d=d, p=pad)

    out_nhwc = pl.pallas_call(
        kernel,
        out_shape=jax.ShapeDtypeStruct((N, H, W, nOut), jnp.float32),
        grid_spec=pltpu.PrefetchScalarGridSpec(
            num_scalar_prefetch=0,
            grid=(N,),
            in_specs=[
                pl.BlockSpec((1, H, W, nOut), lambda n: (n, 0, 0, 0)),
                pl.BlockSpec((k, k, nOut), lambda n: (0, 0, 0)),
            ],
            out_specs=pl.BlockSpec((1, H, W, nOut), lambda n: (n, 0, 0, 0)),
            scratch_shapes=[pltpu.VMEM((H + 2 * pad, W + 2 * pad, nOut),
                                       jnp.float32)],
        ),
        compiler_params=pltpu.CompilerParams(
            dimension_semantics=("parallel",),
            vmem_limit_bytes=64 * 1024 * 1024,
        ),
    )(x, w)

    out = jnp.transpose(out_nhwc, (0, 3, 1, 2))                      # NCHW
    if stride > 1:
        # With "same" padding, the strided conv equals the stride-1 conv
        # subsampled every `stride` pixels.
        # TODO(synk): fold the stride into the kernel slices to avoid the
        # wasted rows/cols for stride > 1 (CGNet always uses stride == 1 here).
        out = out[:, :, ::stride, ::stride]
    return out


# ------------------------- pure-JAX reference (NCHW) -------------------------
def reference_forward(x, weight, *, stride=1, d=1):
    nIn = x.shape[1]
    k = weight.shape[-1]
    pad = ((k - 1) // 2) * d
    return lax.conv_general_dilated(
        x, weight, window_strides=(stride, stride),
        padding=[(pad, pad), (pad, pad)],
        rhs_dilation=(d, d),
        dimension_numbers=("NCHW", "OIHW", "NCHW"),
        feature_group_count=nIn)


if __name__ == "__main__":
    key = jax.random.PRNGKey(0)
    k1, k2, k3, k4 = jax.random.split(key, 4)

    # Case 1: CGNet configuration -- nOut == nIn, kSize=3, stride=1, dilation=2.
    N, C, H, W = 2, 8, 16, 16
    x = jax.random.normal(k1, (N, C, H, W), jnp.float32)
    w = 0.1 * jax.random.normal(k2, (C, 1, 3, 3), jnp.float32)
    out = jax.block_until_ready(channel_wise_dilated_conv(x, w, stride=1, d=2))
    ref = jax.block_until_ready(reference_forward(x, w, stride=1, d=2))
    assert out.shape == ref.shape, (out.shape, ref.shape)
    err1 = float(jnp.max(jnp.abs(out - ref)))
    assert err1 < 1e-4, f"case1 max abs err {err1}"

    # Case 2: channel multiplier (nOut = 2 * nIn), dilation=1.
    nIn2, nOut2 = 4, 8
    x2 = jax.random.normal(k3, (N, nIn2, H, W), jnp.float32)
    w2 = 0.1 * jax.random.normal(k4, (nOut2, 1, 3, 3), jnp.float32)
    out2 = jax.block_until_ready(channel_wise_dilated_conv(x2, w2, stride=1, d=1))
    ref2 = jax.block_until_ready(reference_forward(x2, w2, stride=1, d=1))
    assert out2.shape == ref2.shape, (out2.shape, ref2.shape)
    err2 = float(jnp.max(jnp.abs(out2 - ref2)))
    assert err2 < 1e-4, f"case2 max abs err {err2}"

    # Case 3: stride-2 down-sampling (stride handled by wrapper subsampling).
    out3 = jax.block_until_ready(channel_wise_dilated_conv(x, w, stride=2, d=2))
    ref3 = jax.block_until_ready(reference_forward(x, w, stride=2, d=2))
    assert out3.shape == ref3.shape, (out3.shape, ref3.shape)
    err3 = float(jnp.max(jnp.abs(out3 - ref3)))
    assert err3 < 1e-4, f"case3 max abs err {err3}"

    print("KERNEL_OK")
</pallas_src>

<mosaic_0001>
module attributes {stable_mosaic.version = 11 : i64} {
  func.func @_dw_dilated_conv_kernel(%arg0: i32, %arg1: memref<1x16x16x8xf32, #tpu.memory_space<vmem>>, %arg2: memref<3x3x8xf32, #tpu.memory_space<vmem>>, %arg3: memref<1x16x16x8xf32, #tpu.memory_space<vmem>>, %arg4: memref<20x20x8xf32, #tpu.memory_space<vmem>>) attributes {dimension_semantics = [#tpu.dimension_semantics<parallel>], iteration_bounds = array<i64: 2>, scalar_prefetch = 0 : i64, scratch_operands = 1 : i64, tpu.core_type = #tpu.core_type<tc>, window_params = [{transform_indices = @transform_0, window_bounds = array<i64: 1, 16, 16, 8>}, {pipeline_mode = #tpu.pipeline_mode<synchronous>, transform_indices = @transform_1, window_bounds = array<i64: 3, 3, 8>}, {transform_indices = @transform_2, window_bounds = array<i64: 1, 16, 16, 8>}]} {
    %cst = arith.constant 0.000000e+00 : f32
    %0 = vector.broadcast %cst : f32 to vector<2x20x8xf32>
    %c0 = arith.constant 0 : index
    %c0_0 = arith.constant 0 : index
    %c0_1 = arith.constant 0 : index
    %1 = vector.load %arg4[%c0, %c0_0, %c0_1] : memref<20x20x8xf32, #tpu.memory_space<vmem>>, vector<2x20x8xf32>
    tpu.vector_store %arg4[%c0, %c0_0, %c0_1], %0 {strides = array<i32>} : memref<20x20x8xf32, #tpu.memory_space<vmem>>, vector<2x20x8xf32>,
    %cst_2 = arith.constant 0.000000e+00 : f32
    %2 = vector.broadcast %cst_2 : f32 to vector<2x20x8xf32>
    %c18 = arith.constant 18 : index
    %c0_3 = arith.constant 0 : index
    %c0_4 = arith.constant 0 : index
    %3 = vector.load %arg4[%c18, %c0_3, %c0_4] : memref<20x20x8xf32, #tpu.memory_space<vmem>>, vector<2x20x8xf32>
    tpu.vector_store %arg4[%c18, %c0_3, %c0_4], %2 {strides = array<i32>} : memref<20x20x8xf32, #tpu.memory_space<vmem>>, vector<2x20x8xf32>,
    %cst_5 = arith.constant 0.000000e+00 : f32
    %4 = vector.broadcast %cst_5 : f32 to vector<16x2x8xf32>
    %c2 = arith.constant 2 : index
    %c0_6 = arith.constant 0 : index
    %c0_7 = arith.constant 0 : index
    %5 = vector.load %arg4[%c2, %c0_6, %c0_7] : memref<20x20x8xf32, #tpu.memory_space<vmem>>, vector<16x2x8xf32>
    tpu.vector_store %arg4[%c2, %c0_6, %c0_7], %4 {strides = array<i32>} : memref<20x20x8xf32, #tpu.memory_space<vmem>>, vector<16x2x8xf32>,
    %cst_8 = arith.constant 0.000000e+00 : f32
    %6 = vector.broadcast %cst_8 : f32 to vector<16x2x8xf32>
    %c2_9 = arith.constant 2 : index
    %c18_10 = arith.constant 18 : index
    %c0_11 = arith.constant 0 : index
    %7 = vector.load %arg4[%c2_9, %c18_10, %c0_11] : memref<20x20x8xf32, #tpu.memory_space<vmem>>, vector<16x2x8xf32>
    tpu.vector_store %arg4[%c2_9, %c18_10, %c0_11], %6 {strides = array<i32>} : memref<20x20x8xf32, #tpu.memory_space<vmem>>, vector<16x2x8xf32>,
    %c0_12 = arith.constant 0 : index
    %c0_13 = arith.constant 0 : index
    %c0_14 = arith.constant 0 : index
    %c0_15 = arith.constant 0 : index
    %8 = vector.load %arg1[%c0_12, %c0_13, %c0_14, %c0_15] : memref<1x16x16x8xf32, #tpu.memory_space<vmem>>, vector<1x16x16x8xf32>
    %9 = vector.shape_cast %8 : vector<1x16x16x8xf32> to vector<16x16x8xf32>
    %c2_16 = arith.constant 2 : index
    %c2_17 = arith.constant 2 : index
    %c0_18 = arith.constant 0 : index
    %10 = vector.load %arg4[%c2_16, %c2_17, %c0_18] : memref<20x20x8xf32, #tpu.memory_space<vmem>>, vector<16x16x8xf32>
    tpu.vector_store %arg4[%c2_16, %c2_17, %c0_18], %9 {strides = array<i32>} : memref<20x20x8xf32, #tpu.memory_space<vmem>>, vector<16x16x8xf32>,
    %c0_19 = arith.constant 0 : index
    %c0_20 = arith.constant 0 : index
    %c0_21 = arith.constant 0 : index
    %11 = vector.load %arg2[%c0_19, %c0_20, %c0_21] : memref<3x3x8xf32, #tpu.memory_space<vmem>>, vector<3x3x8xf32>
    %cst_22 = arith.constant 0.000000e+00 : f32
    %12 = vector.broadcast %cst_22 : f32 to vector<16x16x8xf32>
    %c0_23 = arith.constant 0 : index
    %c0_24 = arith.constant 0 : index
    %c0_25 = arith.constant 0 : index
    %13 = vector.load %arg4[%c0_23, %c0_24, %c0_25] : memref<20x20x8xf32, #tpu.memory_space<vmem>>, vector<20x16x8xf32>
    %14 = vector.extract_strided_slice %13 {offsets = [0, 0, 0], sizes = [16, 16, 8], strides = [1, 1, 1]} : vector<20x16x8xf32> to vector<16x16x8xf32>
    %15 = vector.extract_strided_slice %11 {offsets = [0, 0, 0], sizes = [1, 1, 8], strides = [1, 1, 1]} : vector<3x3x8xf32> to vector<1x1x8xf32>
    %16 = vector.shape_cast %15 : vector<1x1x8xf32> to vector<1x8xf32>
    %17 = vector.shape_cast %16 : vector<1x8xf32> to vector<1x1x8xf32>
    %18 = vector.broadcast %17 : vector<1x1x8xf32> to vector<16x16x8xf32>
    %19 = arith.mulf %14, %18 : vector<16x16x8xf32>
    %20 = arith.addf %12, %19 : vector<16x16x8xf32>
    %21 = vector.extract_strided_slice %13 {offsets = [2, 0, 0], sizes = [16, 16, 8], strides = [1, 1, 1]} : vector<20x16x8xf32> to vector<16x16x8xf32>
    %22 = vector.extract_strided_slice %11 {offsets = [1, 0, 0], sizes = [1, 1, 8], strides = [1, 1, 1]} : vector<3x3x8xf32> to vector<1x1x8xf32>
    %23 = vector.shape_cast %22 : vector<1x1x8xf32> to vector<1x8xf32>
    %24 = vector.shape_cast %23 : vector<1x8xf32> to vector<1x1x8xf32>
    %25 = vector.broadcast %24 : vector<1x1x8xf32> to vector<16x16x8xf32>
    %26 = arith.mulf %21, %25 : vector<16x16x8xf32>
    %27 = arith.addf %20, %26 : vector<16x16x8xf32>
    %28 = vector.extract_strided_slice %13 {offsets = [4, 0, 0], sizes = [16, 16, 8], strides = [1, 1, 1]} : vector<20x16x8xf32> to vector<16x16x8xf32>
    %29 = vector.extract_strided_slice %11 {offsets = [2, 0, 0], sizes = [1, 1, 8], strides = [1, 1, 1]} : vector<3x3x8xf32> to vector<1x1x8xf32>
    %30 = vector.shape_cast %29 : vector<1x1x8xf32> to vector<1x8xf32>
    %31 = vector.shape_cast %30 : vector<1x8xf32> to vector<1x1x8xf32>
    %32 = vector.broadcast %31 : vector<1x1x8xf32> to vector<16x16x8xf32>
    %33 = arith.mulf %28, %32 : vector<16x16x8xf32>
    %34 = arith.addf %27, %33 : vector<16x16x8xf32>
    %c0_26 = arith.constant 0 : index
    %c2_27 = arith.constant 2 : index
    %c0_28 = arith.constant 0 : index
    %35 = vector.load %arg4[%c0_26, %c2_27, %c0_28] : memref<20x20x8xf32, #tpu.memory_space<vmem>>, vector<20x16x8xf32>
    %36 = vector.extract_strided_slice %35 {offsets = [0, 0, 0], sizes = [16, 16, 8], strides = [1, 1, 1]} : vector<20x16x8xf32> to vector<16x16x8xf32>
    %37 = vector.extract_strided_slice %11 {offsets = [0, 1, 0], sizes = [1, 1, 8], strides = [1, 1, 1]} : vector<3x3x8xf32> to vector<1x1x8xf32>
    %38 = vector.shape_cast %37 : vector<1x1x8xf32> to vector<1x8xf32>
    %39 = vector.shape_cast %38 : vector<1x8xf32> to vector<1x1x8xf32>
    %40 = vector.broadcast %39 : vector<1x1x8xf32> to vector<16x16x8xf32>
    %41 = arith.mulf %36, %40 : vector<16x16x8xf32>
    %42 = arith.addf %34, %41 : vector<16x16x8xf32>
    %43 = vector.extract_strided_slice %35 {offsets = [2, 0, 0], sizes = [16, 16, 8], strides = [1, 1, 1]} : vector<20x16x8xf32> to vector<16x16x8xf32>
    %44 = vector.extract_strided_slice %11 {offsets = [1, 1, 0], sizes = [1, 1, 8], strides = [1, 1, 1]} : vector<3x3x8xf32> to vector<1x1x8xf32>
    %45 = vector.shape_cast %44 : vector<1x1x8xf32> to vector<1x8xf32>
    %46 = vector.shape_cast %45 : vector<1x8xf32> to vector<1x1x8xf32>
    %47 = vector.broadcast %46 : vector<1x1x8xf32> to vector<16x16x8xf32>
    %48 = arith.mulf %43, %47 : vector<16x16x8xf32>
    %49 = arith.addf %42, %48 : vector<16x16x8xf32>
    %50 = vector.extract_strided_slice %35 {offsets = [4, 0, 0], sizes = [16, 16, 8], strides = [1, 1, 1]} : vector<20x16x8xf32> to vector<16x16x8xf32>
    %51 = vector.extract_strided_slice %11 {offsets = [2, 1, 0], sizes = [1, 1, 8], strides = [1, 1, 1]} : vector<3x3x8xf32> to vector<1x1x8xf32>
    %52 = vector.shape_cast %51 : vector<1x1x8xf32> to vector<1x8xf32>
    %53 = vector.shape_cast %52 : vector<1x8xf32> to vector<1x1x8xf32>
    %54 = vector.broadcast %53 : vector<1x1x8xf32> to vector<16x16x8xf32>
    %55 = arith.mulf %50, %54 : vector<16x16x8xf32>
    %56 = arith.addf %49, %55 : vector<16x16x8xf32>
    %c0_29 = arith.constant 0 : index
    %c4 = arith.constant 4 : index
    %c0_30 = arith.constant 0 : index
    %57 = vector.load %arg4[%c0_29, %c4, %c0_30] : memref<20x20x8xf32, #tpu.memory_space<vmem>>, vector<20x16x8xf32>
    %58 = vector.extract_strided_slice %57 {offsets = [0, 0, 0], sizes = [16, 16, 8], strides = [1, 1, 1]} : vector<20x16x8xf32> to vector<16x16x8xf32>
    %59 = vector.extract_strided_slice %11 {offsets = [0, 2, 0], sizes = [1, 1, 8], strides = [1, 1, 1]} : vector<3x3x8xf32> to vector<1x1x8xf32>
    %60 = vector.shape_cast %59 : vector<1x1x8xf32> to vector<1x8xf32>
    %61 = vector.shape_cast %60 : vector<1x8xf32> to vector<1x1x8xf32>
    %62 = vector.broadcast %61 : vector<1x1x8xf32> to vector<16x16x8xf32>
    %63 = arith.mulf %58, %62 : vector<16x16x8xf32>
    %64 = arith.addf %56, %63 : vector<16x16x8xf32>
    %65 = vector.extract_strided_slice %57 {offsets = [2, 0, 0], sizes = [16, 16, 8], strides = [1, 1, 1]} : vector<20x16x8xf32> to vector<16x16x8xf32>
    %66 = vector.extract_strided_slice %11 {offsets = [1, 2, 0], sizes = [1, 1, 8], strides = [1, 1, 1]} : vector<3x3x8xf32> to vector<1x1x8xf32>
    %67 = vector.shape_cast %66 : vector<1x1x8xf32> to vector<1x8xf32>
    %68 = vector.shape_cast %67 : vector<1x8xf32> to vector<1x1x8xf32>
    %69 = vector.broadcast %68 : vector<1x1x8xf32> to vector<16x16x8xf32>
    %70 = arith.mulf %65, %69 : vector<16x16x8xf32>
    %71 = arith.addf %64, %70 : vector<16x16x8xf32>
    %72 = vector.extract_strided_slice %57 {offsets = [4, 0, 0], sizes = [16, 16, 8], strides = [1, 1, 1]} : vector<20x16x8xf32> to vector<16x16x8xf32>
    %73 = vector.extract_strided_slice %11 {offsets = [2, 2, 0], sizes = [1, 1, 8], strides = [1, 1, 1]} : vector<3x3x8xf32> to vector<1x1x8xf32>
    %74 = vector.shape_cast %73 : vector<1x1x8xf32> to vector<1x8xf32>
    %75 = vector.shape_cast %74 : vector<1x8xf32> to vector<1x1x8xf32>
    %76 = vector.broadcast %75 : vector<1x1x8xf32> to vector<16x16x8xf32>
    %77 = arith.mulf %72, %76 : vector<16x16x8xf32>
    %78 = arith.addf %71, %77 : vector<16x16x8xf32>
    %79 = vector.shape_cast %78 : vector<16x16x8xf32> to vector<1x16x16x8xf32>
    %c0_31 = arith.constant 0 : index
    %c0_32 = arith.constant 0 : index
    %c0_33 = arith.constant 0 : index
    %c0_34 = arith.constant 0 : index
    %80 = vector.load %arg3[%c0_31, %c0_32, %c0_33, %c0_34] : memref<1x16x16x8xf32, #tpu.memory_space<vmem>>, vector<1x16x16x8xf32>
    tpu.vector_store %arg3[%c0_31, %c0_32, %c0_33, %c0_34], %79 {strides = array<i32>} : memref<1x16x16x8xf32, #tpu.memory_space<vmem>>, vector<1x16x16x8xf32>,
    return
  }
  func.func @transform_0(%arg0: i32) -> (i32, i32, i32, i32) {
    %c0_i32 = arith.constant 0 : i32
    %c0_i32_0 = arith.constant 0 : i32
    %c0_i32_1 = arith.constant 0 : i32
    %c0_i32_2 = arith.constant 0 : i32
    return %arg0, %c0_i32, %c0_i32_0, %c0_i32_1 : i32, i32, i32, i32
  }
  func.func @transform_1(%arg0: i32) -> (i32, i32, i32) {
    %c0_i32 = arith.constant 0 : i32
    %c0_i32_0 = arith.constant 0 : i32
    %c0_i32_1 = arith.constant 0 : i32
    %c0_i32_2 = arith.constant 0 : i32
    return %c0_i32, %c0_i32_0, %c0_i32_1 : i32, i32, i32
  }
  func.func @transform_2(%arg0: i32) -> (i32, i32, i32, i32) {
    %c0_i32 = arith.constant 0 : i32
    %c0_i32_0 = arith.constant 0 : i32
    %c0_i32_1 = arith.constant 0 : i32
    %c0_i32_2 = arith.constant 0 : i32
    return %arg0, %c0_i32, %c0_i32_0, %c0_i32_1 : i32, i32, i32, i32
  }
}

</mosaic_0001>

<bundles_post_ra>
// kernel: tpu_custom_call.1
= control target key start
LH: loop header
LB: loop body
LE: loop exit
PB: predicated region body
PF: predicated region fallthrough
CT: control target
= control target key end

     0   :  { %s1125_s9 = smov 0   ;;  %s2108_s0 = inlined_call_operand.vmem [shape: f32[2,16,16,8], index: 0, kind: input, shape index: {}]   ;;  %s2109_s1 = inlined_call_operand.vmem [shape: f32[3,3,8], index: 1, kind: input, shape index: {}]   ;;  %s2110_s2 = inlined_call_operand.vmem [shape: f32[2,16,16,8], index: 2, kind: output, shape index: {}]  }
   0x1 LB: > { %s1079_s10 = sadd.s32 4294967295, %s1107_s9   ;;  %p1083_p0 = scmp.ge.s32.totalorder %s1107_s9, 1  ;;  %s1107_s9 = sphi %s1125_s9, %s12_s9  }
   0x2   : > { %p112_p1 = scmp.lt.s32.totalorder %s1107_s9, 3 }
   0x4   : > { %p113_p2 = pnand %p1083_p0, %p112_p1 }
   0x5   : > { %p1135_p3 = scmp.lt.s32.totalorder (!%p113_p2), %s1079_s10, 1 }
   0x6   : > { %116 = sbr.rel (%p113_p2) target bundleno = 187 (0xbb), region = 28 }
   0xb   : > { %vm144_vm0 = vcmask 64512   ;;  %vm147_vm1 = vcmask 60416   ;;  %vm160_vm2 = vcmask 58368   ;;  %v1109_v0 = vmov 0.0   ;;  %s2113_s10 = smov (!%p1135_p3, %s1079_s10), 1 }
   0xc   : > { %145 = vst.msk [vmem:[#allocation2] sm:$0xff] %vm144_vm0, %v1109_v0  ;;  %146 = vst.msk [vmem:[#allocation2 + $0x8] sm:$0xff] %vm144_vm0, %v1109_v0  ;;  %v300_v1 = vlaneseq  ;;  %s1090_s12 = sshll.u32 %s2113_s10, 8  ;;  %v1211_v12 = vld [vmem:[%s2109_s1] sm:$0x7] }
   0xd   : > { %149 = vst.msk [vmem:[#allocation2 + $0x18] sm:$0xff] %vm144_vm0, %v1109_v0  ;;  %150 = vst.msk [vmem:[#allocation2 + $0x20] sm:$0xff] %vm144_vm0, %v1109_v0  ;;  %s1191_s15 = scalar_lea.vmem %s2108_s0, %s1090_s12  ;;  %v1222_v16 = vld [vmem:[%s2109_s1 + $0x4] sm:$0x7]  ;;  %v259_v24 = vld [vmem:[%s2109_s1 + $0x8] sm:$0x7]  ;;  %s1396_s24 = scalar_lea.vmem %s2110_s2, %s1090_s12 }
   0xe   : > { %153 = vst.msk [vmem:[#allocation2 + $0x1b0] sm:$0xff] %vm144_vm0, %v1109_v0  ;;  %154 = vst.msk [vmem:[#allocation2 + $0x1b8] sm:$0xff] %vm144_vm0, %v1109_v0  ;;  %v301_v2 = vshrl.u32 %v300_v1, 7  ;;  %v193_v3 = vld [vmem:[%s1191_s15] sm:$0xff]  ;;  %v194_v4 = vld [vmem:[%s1191_s15 + $0x8] sm:$0xff] }
   0xf   : > { %156 = vst.msk [vmem:[#allocation2 + $0x1c8] sm:$0xff] %vm144_vm0, %v1109_v0  ;;  %157 = vst.msk [vmem:[#allocation2 + $0x1d0] sm:$0xff] %vm144_vm0, %v1109_v0  ;;  %v195_v5 = vld [vmem:[%s1191_s15 + $0x10] sm:$0xff]  ;;  %v196_v6 = vld [vmem:[%s1191_s15 + $0x18] sm:$0xff] }
  0x10   : > { %148 = vst.msk [vmem:[#allocation2 + $0x10] sm:$0xf] %vm147_vm1, %v1109_v0  ;;  %151 = vst.msk [vmem:[#allocation2 + $0x28] sm:$0xf] %vm147_vm1, %v1109_v0  ;;  %v197_v7 = vld [vmem:[%s1191_s15 + $0x20] sm:$0xff]  ;;  %v198_v8 = vld [vmem:[%s1191_s15 + $0x28] sm:$0xff] }
  0x11   : > { %155 = vst.msk [vmem:[#allocation2 + $0x1c0] sm:$0xf] %vm147_vm1, %v1109_v0  ;;  %158 = vst.msk [vmem:[#allocation2 + $0x1d8] sm:$0xf] %vm147_vm1, %v1109_v0  ;;  %v199_v9 = vld [vmem:[%s1191_s15 + $0x30] sm:$0xff]  ;;  %v200_v10 = vld [vmem:[%s1191_s15 + $0x38] sm:$0xff] }
  0x12   : > { %161 = vst.msk [vmem:[#allocation2 + $0x30] sm:$0x3] %vm160_vm2, %v1109_v0  ;;  %162 = vst.msk [vmem:[#allocation2 + $0x48] sm:$0x3] %vm160_vm2, %v1109_v0  ;;  %v201_v11 = vld [vmem:[%s1191_s15 + $0x40] sm:$0xff]  ;;  %v202_v13 = vld [vmem:[%s1191_s15 + $0x48] sm:$0xff] }
  0x13   : > { %163 = vst.msk [vmem:[#allocation2 + $0x60] sm:$0x3] %vm160_vm2, %v1109_v0  ;;  %164 = vst.msk [vmem:[#allocation2 + $0x78] sm:$0x3] %vm160_vm2, %v1109_v0  ;;  %v203_v14 = vld [vmem:[%s1191_s15 + $0x50] sm:$0xff]  ;;  %v204_v15 = vld [vmem:[%s1191_s15 + $0x58] sm:$0xff] }
  0x14   : > { %165 = vst.msk [vmem:[#allocation2 + $0x90] sm:$0x3] %vm160_vm2, %v1109_v0  ;;  %166 = vst.msk [vmem:[#allocation2 + $0xa8] sm:$0x3] %vm160_vm2, %v1109_v0  ;;  %v302_v17 = vsub.s32 0, %v301_v2  ;;  %v205_v18 = vld [vmem:[%s1191_s15 + $0x60] sm:$0xff] }
  0x15   : > { %167 = vst.msk [vmem:[#allocation2 + $0xc0] sm:$0x3] %vm160_vm2, %v1109_v0  ;;  %168 = vst.msk [vmem:[#allocation2 + $0xd8] sm:$0x3] %vm160_vm2, %v1109_v0  ;;  %v206_v19 = vld [vmem:[%s1191_s15 + $0x68] sm:$0xff]  ;;  %v207_v20 = vld [vmem:[%s1191_s15 + $0x70] sm:$0xff] }
  0x16   : > { %169 = vst.msk [vmem:[#allocation2 + $0xf0] sm:$0x3] %vm160_vm2, %v1109_v0  ;;  %170 = vst.msk [vmem:[#allocation2 + $0x108] sm:$0x3] %vm160_vm2, %v1109_v0  ;;  %v208_v21 = vld [vmem:[%s1191_s15 + $0x78] sm:$0xff]  ;;  %v209_v22 = vld [vmem:[%s1191_s15 + $0x80] sm:$0xff]  ;;  %v1252_v31 = vrot.slane %v1211_v12, %v302_v17  ;;  %v1261_v36 = vrot.slane %v1222_v16, %v302_v17  ;;  %v1274_v44 = vrot.slane %v259_v24, %v302_v17 }
  0x17   : > { %171 = vst.msk [vmem:[#allocation2 + $0x120] sm:$0x3] %vm160_vm2, %v1109_v0  ;;  %172 = vst.msk [vmem:[#allocation2 + $0x138] sm:$0x3] %vm160_vm2, %v1109_v0  ;;  %v210_v23 = vld [vmem:[%s1191_s15 + $0x88] sm:$0xff]  ;;  %v211_v25 = vld [vmem:[%s1191_s15 + $0x90] sm:$0xff] }
  0x18   : > { %173 = vst.msk [vmem:[#allocation2 + $0x150] sm:$0x3] %vm160_vm2, %v1109_v0  ;;  %174 = vst.msk [vmem:[#allocation2 + $0x168] sm:$0x3] %vm160_vm2, %v1109_v0  ;;  %v212_v26 = vld [vmem:[%s1191_s15 + $0x98] sm:$0xff]  ;;  %v213_v27 = vld [vmem:[%s1191_s15 + $0xa0] sm:$0xff] }
  0x19   : > { %175 = vst.msk [vmem:[#allocation2 + $0x180] sm:$0x3] %vm160_vm2, %v1109_v0  ;;  %176 = vst.msk [vmem:[#allocation2 + $0x198] sm:$0x3] %vm160_vm2, %v1109_v0  ;;  %v214_v28 = vld [vmem:[%s1191_s15 + $0xa8] sm:$0xff]  ;;  %v215_v29 = vld [vmem:[%s1191_s15 + $0xb0] sm:$0xff] }
  0x1a   : > { %177 = vst.msk [vmem:[#allocation2 + $0x42] sm:$0x3] %vm160_vm2, %v1109_v0  ;;  %178 = vst.msk [vmem:[#allocation2 + $0x5a] sm:$0x3] %vm160_vm2, %v1109_v0  ;;  %v216_v30 = vld [vmem:[%s1191_s15 + $0xb8] sm:$0xff]  ;;  %v546_v32 = vsub.s32 1, %v301_v2 }
  0x1b   : > { %179 = vst.msk [vmem:[#allocation2 + $0x72] sm:$0x3] %vm160_vm2, %v1109_v0  ;;  %180 = vst.msk [vmem:[#allocation2 + $0x8a] sm:$0x3] %vm160_vm2, %v1109_v0  ;;  %v217_v33 = vld [vmem:[%s1191_s15 + $0xc0] sm:$0xff]  ;;  %v218_v34 = vld [vmem:[%s1191_s15 + $0xc8] sm:$0xff] }
  0x1c   : > { %181 = vst.msk [vmem:[#allocation2 + $0xa2] sm:$0x3] %vm160_vm2, %v1109_v0  ;;  %182 = vst.msk [vmem:[#allocation2 + $0xba] sm:$0x3] %vm160_vm2, %v1109_v0  ;;  %v219_v35 = vld [vmem:[%s1191_s15 + $0xd0] sm:$0xff]  ;;  %v790_v37 = vsub.s32 2, %v301_v2  ;;  %v1282_v48 = vrot.slane %v1211_v12, %v546_v32  ;;  %v1288_v52 = vrot.slane %v1222_v16, %v546_v32  ;;  %v1290_v53 = vrot.slane %v259_v24, %v546_v32 }
  0x1d   : > { %183 = vst.msk [vmem:[#allocation2 + $0xd2] sm:$0x3] %vm160_vm2, %v1109_v0  ;;  %184 = vst.msk [vmem:[#allocation2 + $0xea] sm:$0x3] %vm160_vm2, %v1109_v0  ;;  %v220_v38 = vld [vmem:[%s1191_s15 + $0xd8] sm:$0xff]  ;;  %v221_v39 = vld [vmem:[%s1191_s15 + $0xe0] sm:$0xff] }
  0x1e   : > { %185 = vst.msk [vmem:[#allocation2 + $0x102] sm:$0x3] %vm160_vm2, %v1109_v0  ;;  %186 = vst.msk [vmem:[#allocation2 + $0x11a] sm:$0x3] %vm160_vm2, %v1109_v0  ;;  %v222_v40 = vld [vmem:[%s1191_s15 + $0xe8] sm:$0xff]  ;;  %v223_v41 = vld [vmem:[%s1191_s15 + $0xf0] sm:$0xff]  ;;  %v1293_v54 = vrot.slane %v1211_v12, %v790_v37  ;;  %v1298_v57 = vrot.slane %v1222_v16, %v790_v37  ;;  %v1304_v62 = vrot.slane %v259_v24, %v790_v37 }
  0x1f   : > { %187 = vst.msk [vmem:[#allocation2 + $0x132] sm:$0x3] %vm160_vm2, %v1109_v0  ;;  %188 = vst.msk [vmem:[#allocation2 + $0x14a] sm:$0x3] %vm160_vm2, %v1109_v0  ;;  %v224_v42 = vld [vmem:[%s1191_s15 + $0xf8] sm:$0xff]  ;;  %v260_v43 = vld [vmem:[#allocation2] sm:$0xff] }
  0x20   : > { %189 = vst.msk [vmem:[#allocation2 + $0x162] sm:$0x3] %vm160_vm2, %v1109_v0  ;;  %190 = vst.msk [vmem:[#allocation2 + $0x17a] sm:$0x3] %vm160_vm2, %v1109_v0  ;;  %v304_v47 = vmul.f32 %v1252_v31, %v260_v43  ;;  %v504_v50 = vld [vmem:[#allocation2 + $0x2] sm:$0xff]  ;;  %v506_v32 = vld [vmem:[#allocation2 + $0x1a] sm:$0xff] }
  0x21   : > { %191 = vst.msk [vmem:[#allocation2 + $0x192] sm:$0x3] %vm160_vm2, %v1109_v0  ;;  %192 = vst.msk [vmem:[#allocation2 + $0x1aa] sm:$0x3] %vm160_vm2, %v1109_v0  ;;  %v748_v56 = vld [vmem:[#allocation2 + $0x4] sm:$0xff]  ;;  %v548_v2 = vmul.f32 %v1282_v48, %v504_v50 }
  0x22   : > { %225 = vst.msk [vmem:[#allocation2 + $0x32] sm:$0xff] %vm144_vm0, %v193_v3  ;;  %226 = vst.msk [vmem:[#allocation2 + $0x3a] sm:$0xff] %vm144_vm0, %v194_v4  ;;  %v261_v58 = vld [vmem:[#allocation2 + $0x8] sm:$0xff] }
  0x23   : > { %227 = vst.msk [vmem:[#allocation2 + $0x4a] sm:$0xff] %vm144_vm0, %v195_v5  ;;  %228 = vst.msk [vmem:[#allocation2 + $0x52] sm:$0xff] %vm144_vm0, %v196_v6  ;;  %v305_v1 = vmul.f32 %v1252_v31, %v261_v58  ;;  %v505_v5 = vld [vmem:[#allocation2 + $0xa] sm:$0xff] }
  0x24   : > { %229 = vst.msk [vmem:[#allocation2 + $0x62] sm:$0xff] %vm144_vm0, %v197_v7  ;;  %230 = vst.msk [vmem:[#allocation2 + $0x6a] sm:$0xff] %vm144_vm0, %v198_v8  ;;  %v549_v24 = vmul.f32 %v1282_v48, %v505_v5 }
  0x25   : > { %231 = vst.msk [vmem:[#allocation2 + $0x7a] sm:$0xff] %vm144_vm0, %v199_v9  ;;  %232 = vst.msk [vmem:[#allocation2 + $0x82] sm:$0xff] %vm144_vm0, %v200_v10 }
  0x26   : > { %233 = vst.msk [vmem:[#allocation2 + $0x92] sm:$0xff] %vm144_vm0, %v201_v11  ;;  %234 = vst.msk [vmem:[#allocation2 + $0x9a] sm:$0xff] %vm144_vm0, %v202_v13  ;;  %v792_v11 = vmul.f32 %v1293_v54, %v748_v56 }
  0x27   : > { %235 = vst.msk [vmem:[#allocation2 + $0xaa] sm:$0xff] %vm144_vm0, %v203_v14  ;;  %236 = vst.msk [vmem:[#allocation2 + $0xb2] sm:$0xff] %vm144_vm0, %v204_v15  ;;  %v262_v14 = vld [vmem:[#allocation2 + $0x18] sm:$0xff] }
  0x28   : > { %237 = vst.msk [vmem:[#allocation2 + $0xc2] sm:$0xff] %vm144_vm0, %v205_v18  ;;  %238 = vst.msk [vmem:[#allocation2 + $0xca] sm:$0xff] %vm144_vm0, %v206_v19  ;;  %v749_v18 = vld [vmem:[#allocation2 + $0xc] sm:$0xff] }
  0x29   : > { %239 = vst.msk [vmem:[#allocation2 + $0xda] sm:$0xff] %vm144_vm0, %v207_v20  ;;  %240 = vst.msk [vmem:[#allocation2 + $0xe2] sm:$0xff] %vm144_vm0, %v208_v21  ;;  %v264_v45 = vld [vmem:[#allocation2 + $0x30] sm:$0xff]  ;;  %v1306_v63 = vld [vmem:[#allocation2 + $0x38] sm:$0xff]  ;;  %v306_v21 = vmul.f32 %v1252_v31, %v262_v14  ;;  %v793_v37 = vmul.f32 %v1293_v54, %v749_v18 }
  0x2a   : > { %241 = vst.msk [vmem:[#allocation2 + $0xf2] sm:$0xff] %vm144_vm0, %v209_v22  ;;  %242 = vst.msk [vmem:[#allocation2 + $0xfa] sm:$0xff] %vm144_vm0, %v210_v23  ;;  %v372_v49 = vmul.f32 %v1261_v36, %v264_v45  ;;  %v1285_v51 = vld [vmem:[#allocation2 + $0x32] sm:$0xff]  ;;  %v373_v4 = vmul.f32 %v1261_v36, %v1306_v63  ;;  %v308_v6 = vmul.f32 %v1252_v31, %v264_v45  ;;  %v1324_v12 = vld [vmem:[#allocation2 + $0x3a] sm:$0xff] }
  0x2b   : > { %243 = vst.msk [vmem:[#allocation2 + $0x10a] sm:$0xff] %vm144_vm0, %v211_v25  ;;  %244 = vst.msk [vmem:[#allocation2 + $0x112] sm:$0xff] %vm144_vm0, %v212_v26  ;;  %v1278_v46 = vld [vmem:[#allocation2 + $0x60] sm:$0xff]  ;;  %v1302_v61 = vld [vmem:[#allocation2 + $0x34] sm:$0xff]  ;;  %v616_v9 = vmul.f32 %v1288_v52, %v1285_v51 }
  0x2c   : > { %245 = vst.msk [vmem:[#allocation2 + $0x122] sm:$0xff] %vm144_vm0, %v213_v27  ;;  %246 = vst.msk [vmem:[#allocation2 + $0x12a] sm:$0xff] %vm144_vm0, %v214_v28  ;;  %v1295_v55 = vld [vmem:[#allocation2 + $0x62] sm:$0xff]  ;;  %v404_v59 = vadd.f32 %v372_v49, %v304_v47  ;;  %v440_v60 = vmul.f32 %v1274_v44, %v1278_v46  ;;  %v376_v7 = vmul.f32 %v1261_v36, %v1278_v46  ;;  %v1326_v13 = vld [vmem:[#allocation2 + $0x6a] sm:$0xff] }
  0x2d   : > { %247 = vst.msk [vmem:[#allocation2 + $0x13a] sm:$0xff] %vm144_vm0, %v215_v29  ;;  %248 = vst.msk [vmem:[#allocation2 + $0x142] sm:$0xff] %vm144_vm0, %v216_v30  ;;  %v1308_v0 = vld [vmem:[#allocation2 + $0x68] sm:$0xff]  ;;  %v684_v10 = vmul.f32 %v1290_v53, %v1295_v55  ;;  %v860_v15 = vmul.f32 %v1298_v57, %v1302_v61  ;;  %v405_v16 = vadd.f32 %v373_v4, %v305_v1  ;;  %v1334_v20 = vld [vmem:[#allocation2 + $0x78] sm:$0xff] }
  0x2e   : > { %249 = vst.msk [vmem:[#allocation2 + $0x152] sm:$0xff] %vm144_vm0, %v217_v33  ;;  %250 = vst.msk [vmem:[#allocation2 + $0x15a] sm:$0xff] %vm144_vm0, %v218_v34  ;;  %v1312_v3 = vld [vmem:[#allocation2 + $0x64] sm:$0xff]  ;;  %v472_v8 = vadd.f32 %v440_v60, %v404_v59  ;;  %v441_v17 = vmul.f32 %v1274_v44, %v1308_v0  ;;  %v1340_v25 = vld [vmem:[#allocation2 + $0x3c] sm:$0xff]  ;;  %v617_v28 = vmul.f32 %v1288_v52, %v1324_v12 }
  0x2f   : > { %251 = vst.msk [vmem:[#allocation2 + $0x16a] sm:$0xff] %vm144_vm0, %v219_v35  ;;  %252 = vst.msk [vmem:[#allocation2 + $0x172] sm:$0xff] %vm144_vm0, %v220_v38  ;;  %v1332_v19 = vld [vmem:[#allocation2 + $0x48] sm:$0xff]  ;;  %v928_v23 = vmul.f32 %v1304_v62, %v1312_v3  ;;  %v685_v29 = vmul.f32 %v1290_v53, %v1326_v13  ;;  %v263_v33 = vld [vmem:[#allocation2 + $0x20] sm:$0xff]  ;;  %v408_v34 = vadd.f32 %v376_v7, %v308_v6 }
  0x30   : > { %253 = vst.msk [vmem:[#allocation2 + $0x182] sm:$0xff] %vm144_vm0, %v221_v39  ;;  %254 = vst.msk [vmem:[#allocation2 + $0x18a] sm:$0xff] %vm144_vm0, %v222_v40  ;;  %v580_v22 = vadd.f32 %v548_v2, %v472_v8  ;;  %v374_v26 = vmul.f32 %v1261_v36, %v1332_v19  ;;  %v473_v27 = vadd.f32 %v441_v17, %v405_v16  ;;  %v1348_v30 = vld [vmem:[#allocation2 + $0x6c] sm:$0xff]  ;;  %v1361_v47 = vld [vmem:[#allocation2 + $0x7a] sm:$0xff] }
  0x31   : > { %255 = vst.msk [vmem:[#allocation2 + $0x19a] sm:$0xff] %vm144_vm0, %v223_v41  ;;  %256 = vst.msk [vmem:[#allocation2 + $0x1a2] sm:$0xff] %vm144_vm0, %v224_v42  ;;  %v442_v39 = vmul.f32 %v1274_v44, %v1334_v20  ;;  %v1353_v40 = vld [vmem:[#allocation2 + $0x4a] sm:$0xff]  ;;  %v1357_v42 = vld [vmem:[#allocation2 + $0x80] sm:$0xff]  ;;  %v861_v45 = vmul.f32 %v1298_v57, %v1340_v25  ;;  %v307_v50 = vmul.f32 %v1252_v31, %v263_v33 }
  0x32   : > { %v648_v35 = vadd.f32 %v616_v9, %v580_v22  ;;  %v406_v38 = vadd.f32 %v374_v26, %v306_v21  ;;  %v1355_v41 = vld [vmem:[#allocation2 + $0x50] sm:$0xff]  ;;  %v581_v43 = vadd.f32 %v549_v24, %v473_v27  ;;  %v750_v49 = vld [vmem:[#allocation2 + $0x1c] sm:$0xff]  ;;  %v929_v59 = vmul.f32 %v1304_v62, %v1348_v30 }
  0x33   : > { %v375_v56 = vmul.f32 %v1261_v36, %v1355_v41  ;;  %v550_v1 = vmul.f32 %v1282_v48, %v506_v32  ;;  %v507_v2 = vld [vmem:[#allocation2 + $0x22] sm:$0xff]  ;;  %v1369_v4 = vld [vmem:[#allocation2 + $0x90] sm:$0xff]  ;;  %v618_v6 = vmul.f32 %v1288_v52, %v1353_v40  ;;  %v443_v9 = vmul.f32 %v1274_v44, %v1357_v42 }
  0x34   : > { %v716_v58 = vadd.f32 %v684_v10, %v648_v35  ;;  %v474_v60 = vadd.f32 %v442_v39, %v406_v38  ;;  %v649_v5 = vadd.f32 %v617_v28, %v581_v43  ;;  %v1373_v7 = vld [vmem:[#allocation2 + $0x4c] sm:$0xff]  ;;  %v686_v17 = vmul.f32 %v1290_v53, %v1361_v47  ;;  %v1382_v24 = vld [vmem:[#allocation2 + $0x82] sm:$0xff] }
  0x35   : > { %v407_v8 = vadd.f32 %v375_v56, %v307_v50  ;;  %v1377_v10 = vld [vmem:[#allocation2 + $0x52] sm:$0xff]  ;;  %v794_v18 = vmul.f32 %v1293_v54, %v750_v49  ;;  %v551_v26 = vmul.f32 %v1282_v48, %v507_v2  ;;  %v444_v27 = vmul.f32 %v1274_v44, %v1369_v4  ;;  %v1398_v35 = vld [vmem:[#allocation2 + $0x7c] sm:$0xff]  ;;  %v751_v39 = vld [vmem:[#allocation2 + $0x24] sm:$0xff] }
  0x36   : > { %v824_v14 = vadd.f32 %v792_v11, %v716_v58  ;;  %v582_v16 = vadd.f32 %v550_v1, %v474_v60  ;;  %v717_v21 = vadd.f32 %v685_v29, %v649_v5  ;;  %v862_v11 = vmul.f32 %v1298_v57, %v1373_v7  ;;  %v1404_v58 = vld [vmem:[#allocation2 + $0x92] sm:$0xff] }
  0x37   : > { %v475_v22 = vadd.f32 %v443_v9, %v407_v8  ;;  %v619_v33 = vmul.f32 %v1288_v52, %v1377_v10  ;;  %v552_v43 = vmul.f32 %v1282_v48, %v1285_v51  ;;  %v687_v56 = vmul.f32 %v1290_v53, %v1382_v24  ;;  %v1408_v2 = vld [vmem:[#allocation2 + $0x54] sm:$0xff] }
  0x38   : > { %v892_v28 = vadd.f32 %v860_v15, %v824_v14  ;;  %v650_v32 = vadd.f32 %v618_v6, %v582_v16  ;;  %v825_v29 = vadd.f32 %v793_v37, %v717_v21  ;;  %v476_v15 = vadd.f32 %v444_v27, %v408_v34  ;;  %v1410_v6 = vld [vmem:[#allocation2 + $0x98] sm:$0xff] }
  0x39   : > { %v583_v38 = vadd.f32 %v551_v26, %v475_v22  ;;  %v620_v60 = vmul.f32 %v1288_v52, %v1295_v55  ;;  %v309_v51 = vmul.f32 %v1252_v31, %v1306_v63  ;;  %v930_v34 = vmul.f32 %v1304_v62, %v1398_v35  ;;  %v1423_v22 = vld [vmem:[#allocation2 + $0x84] sm:$0xff] }
  0x3a   : > { %v960_v49 = vadd.f32 %v928_v23, %v892_v28  ;;  %v718_v50 = vadd.f32 %v686_v17, %v650_v32  ;;  %v893_v37 = vadd.f32 %v861_v45, %v825_v29  ;;  %v584_v5 = vadd.f32 %v552_v43, %v476_v15  ;;  %v1437_v29 = vld [vmem:[#allocation2 + $0x94] sm:$0xff] }
  0x3b   : > { %v651_v1 = vadd.f32 %v619_v33, %v583_v38  ;;  %v795_v8 = vmul.f32 %v1293_v54, %v751_v39  ;;  %v377_v45 = vmul.f32 %v1261_v36, %v1308_v0  ;;  %v688_v17 = vmul.f32 %v1290_v53, %v1404_v58  ;;  %v1439_v39 = vld [vmem:[#allocation2 + $0x9a] sm:$0xff] }
  0x3c   : > { %992 = vst.msk [vmem:[%s1396_s24] sm:$0xff] %vm144_vm0, %v960_v49  ;;  %v826_v23 = vadd.f32 %v794_v18, %v718_v50  ;;  %v961_v9 = vadd.f32 %v929_v59, %v893_v37  ;;  %v652_v16 = vadd.f32 %v620_v60, %v584_v5  ;;  %v863_v63 = vmul.f32 %v1298_v57, %v1408_v2 }
  0x3d   : > { %v719_v14 = vadd.f32 %v687_v56, %v651_v1  ;;  %v409_v18 = vadd.f32 %v377_v45, %v309_v51  ;;  %v445_v26 = vmul.f32 %v1274_v44, %v1410_v6  ;;  %v796_v28 = vmul.f32 %v1293_v54, %v1302_v61 }
  0x3e   : > { %v894_v21 = vadd.f32 %v862_v11, %v826_v23  ;;  %993 = vst.msk [vmem:[%s1396_s24 + $0x8] sm:$0xff] %vm144_vm0, %v961_v9  ;;  %v720_v59 = vadd.f32 %v688_v17, %v652_v16  ;;  %v553_v32 = vmul.f32 %v1282_v48, %v1324_v12  ;;  %v1435_v11 = vld [vmem:[#allocation2 + $0xa8] sm:$0xff]  ;;  %v310_v15 = vmul.f32 %v1252_v31, %v1332_v19  ;;  %v1465_v16 = vld [vmem:[#allocation2 + $0xb0] sm:$0xff] }
  0x3f   : > { %v827_v27 = vadd.f32 %v795_v8, %v719_v14  ;;  %v477_v38 = vadd.f32 %v445_v26, %v409_v18  ;;  %v378_v43 = vmul.f32 %v1261_v36, %v1334_v20  ;;  %v931_v61 = vmul.f32 %v1304_v62, %v1423_v22  ;;  %v1459_v8 = vld [vmem:[#allocation2 + $0x9c] sm:$0xff]  ;;  %v1461_v9 = vld [vmem:[#allocation2 + $0xaa] sm:$0xff] }
  0x40   : > { %v962_v33 = vadd.f32 %v930_v34, %v894_v21  ;;  %v828_v50 = vadd.f32 %v796_v28, %v720_v59  ;;  %v864_v12 = vmul.f32 %v1298_v57, %v1312_v3  ;;  %v621_v60 = vmul.f32 %v1288_v52, %v1326_v13 }
  0x41   : > { %v895_v49 = vadd.f32 %v863_v63, %v827_v27  ;;  %v585_v56 = vadd.f32 %v553_v32, %v477_v38  ;;  %v410_v37 = vadd.f32 %v378_v43, %v310_v15  ;;  %v446_v19 = vmul.f32 %v1274_v44, %v1435_v11  ;;  %v1489_v43 = vld [vmem:[#allocation2 + $0xac] sm:$0xff] }
  0x42   : > { %994 = vst.msk [vmem:[%s1396_s24 + $0x10] sm:$0xff] %vm144_vm0, %v962_v33  ;;  %v896_v5 = vadd.f32 %v864_v12, %v828_v50  ;;  %v932_v51 = vmul.f32 %v1304_v62, %v1437_v29  ;;  %v689_v23 = vmul.f32 %v1290_v53, %v1439_v39  ;;  %v554_v14 = vmul.f32 %v1282_v48, %v1353_v40  ;;  %v1487_v33 = vld [vmem:[#allocation2 + $0xc0] sm:$0xff] }
  0x43   : > { %v963_v1 = vadd.f32 %v931_v61, %v895_v49  ;;  %v653_v34 = vadd.f32 %v621_v60, %v585_v56  ;;  %v478_v45 = vadd.f32 %v446_v19, %v410_v37  ;;  %v311_v17 = vmul.f32 %v1252_v31, %v1355_v41 }
  0x44   : > { %v964_v21 = vadd.f32 %v932_v51, %v896_v5  ;;  %v797_v63 = vmul.f32 %v1293_v54, %v1340_v25  ;;  %v379_v18 = vmul.f32 %v1261_v36, %v1357_v42  ;;  %v865_v27 = vmul.f32 %v1298_v57, %v1348_v30 }
  0x45   : > { %995 = vst.msk [vmem:[%s1396_s24 + $0x18] sm:$0xff] %vm144_vm0, %v963_v1  ;;  %v721_v26 = vadd.f32 %v689_v23, %v653_v34  ;;  %v586_v59 = vadd.f32 %v554_v14, %v478_v45  ;;  %v622_v40 = vmul.f32 %v1288_v52, %v1361_v47  ;;  %v933_v41 = vmul.f32 %v1304_v62, %v1459_v8  ;;  %v1501_v1 = vld [vmem:[#allocation2 + $0xb2] sm:$0xff] }
  0x46   : > { %996 = vst.msk [vmem:[%s1396_s24 + $0x20] sm:$0xff] %vm144_vm0, %v964_v21  ;;  %v690_v28 = vmul.f32 %v1290_v53, %v1461_v9  ;;  %v411_v25 = vadd.f32 %v379_v18, %v311_v17  ;;  %v447_v32 = vmul.f32 %v1274_v44, %v1465_v16  ;;  %v312_v49 = vmul.f32 %v1252_v31, %v1278_v46  ;;  %v1511_v14 = vld [vmem:[#allocation2 + $0xb4] sm:$0xff]  ;;  %v1513_v21 = vld [vmem:[#allocation2 + $0xc8] sm:$0xff] }
  0x47   : > { %v829_v38 = vadd.f32 %v797_v63, %v721_v26  ;;  %v654_v15 = vadd.f32 %v622_v40, %v586_v59  ;;  %v380_v61 = vmul.f32 %v1261_v36, %v1369_v4  ;;  %v798_v50 = vmul.f32 %v1293_v54, %v1373_v7  ;;  %v1521_v59 = vld [vmem:[#allocation2 + $0xc2] sm:$0xff] }
  0x48   : > { %v866_v12 = vmul.f32 %v1298_v57, %v1398_v35  ;;  %v479_v56 = vadd.f32 %v447_v32, %v411_v25  ;;  %v555_v60 = vmul.f32 %v1282_v48, %v1377_v10  ;;  %v448_v46 = vmul.f32 %v1274_v44, %v1487_v33 }
  0x49   : > { %v897_v37 = vadd.f32 %v865_v27, %v829_v38  ;;  %v722_v19 = vadd.f32 %v690_v28, %v654_v15  ;;  %v412_v5 = vadd.f32 %v380_v61, %v312_v49  ;;  %v934_v51 = vmul.f32 %v1304_v62, %v1489_v43 }
  0x4a   : > { %v587_v7 = vadd.f32 %v555_v60, %v479_v56  ;;  %v623_v23 = vmul.f32 %v1288_v52, %v1382_v24  ;;  %v556_v34 = vmul.f32 %v1282_v48, %v1295_v55  ;;  %v313_v63 = vmul.f32 %v1252_v31, %v1308_v0 }
  0x4b   : > { %v965_v10 = vadd.f32 %v933_v41, %v897_v37  ;;  %v830_v45 = vadd.f32 %v798_v50, %v722_v19  ;;  %v480_v17 = vadd.f32 %v448_v46, %v412_v5  ;;  %v691_v26 = vmul.f32 %v1290_v53, %v1501_v1  ;;  %v1537_v50 = vld [vmem:[#allocation2 + $0xd8] sm:$0xff]  ;;  %v1541_v37 = vld [vmem:[#allocation2 + $0xca] sm:$0xff] }
  0x4c   : > { %v655_v18 = vadd.f32 %v623_v23, %v587_v7  ;;  %v799_v27 = vmul.f32 %v1293_v54, %v1408_v2  ;;  %v381_v55 = vmul.f32 %v1261_v36, %v1410_v6  ;;  %v867_v41 = vmul.f32 %v1298_v57, %v1423_v22 }
  0x4d   : > { %997 = vst.msk [vmem:[%s1396_s24 + $0x28] sm:$0xff] %vm144_vm0, %v965_v10  ;;  %v898_v40 = vadd.f32 %v866_v12, %v830_v45  ;;  %v588_v28 = vadd.f32 %v556_v34, %v480_v17  ;;  %v624_v0 = vmul.f32 %v1288_v52, %v1404_v58  ;;  %v935_v2 = vmul.f32 %v1304_v62, %v1511_v14  ;;  %v1555_v34 = vld [vmem:[#allocation2 + $0xc4] sm:$0xff] }
  0x4e   : > { %v723_v25 = vadd.f32 %v691_v26, %v655_v18  ;;  %v413_v32 = vadd.f32 %v381_v55, %v313_v63  ;;  %v449_v38 = vmul.f32 %v1274_v44, %v1513_v21  ;;  %v692_v61 = vmul.f32 %v1290_v53, %v1521_v59  ;;  %v1563_v18 = vld [vmem:[#allocation2 + $0xe0] sm:$0xff] }
  0x4f   : > { %v966_v15 = vadd.f32 %v934_v51, %v898_v40  ;;  %v656_v49 = vadd.f32 %v624_v0, %v588_v28  ;;  %v314_v12 = vmul.f32 %v1252_v31, %v1334_v20  ;;  %v557_v19 = vmul.f32 %v1282_v48, %v1326_v13 }
  0x50   : > { %v831_v56 = vadd.f32 %v799_v27, %v723_v25  ;;  %v481_v60 = vadd.f32 %v449_v38, %v413_v32  ;;  %v382_v5 = vmul.f32 %v1261_v36, %v1435_v11  ;;  %v800_v51 = vmul.f32 %v1293_v54, %v1312_v3 }
  0x51   : > { %998 = vst.msk [vmem:[%s1396_s24 + $0x30] sm:$0xff] %vm144_vm0, %v966_v15  ;;  %v724_v46 = vadd.f32 %v692_v61, %v656_v49  ;;  %v868_v7 = vmul.f32 %v1298_v57, %v1437_v29  ;;  %v625_v20 = vmul.f32 %v1288_v52, %v1439_v39  ;;  %v450_v45 = vmul.f32 %v1274_v44, %v1537_v50 }
  0x52   : > { %v899_v23 = vadd.f32 %v867_v41, %v831_v56  ;;  %v589_v10 = vadd.f32 %v557_v19, %v481_v60  ;;  %v414_v13 = vadd.f32 %v382_v5, %v314_v12  ;;  %v693_v63 = vmul.f32 %v1290_v53, %v1541_v37  ;;  %v1567_v41 = vld [vmem:[#allocation2 + $0xda] sm:$0xff] }
  0x53   : > { %v832_v17 = vadd.f32 %v800_v51, %v724_v46  ;;  %v558_v3 = vmul.f32 %v1282_v48, %v1361_v47  ;;  %v315_v26 = vmul.f32 %v1252_v31, %v1357_v42  ;;  %v383_v28 = vmul.f32 %v1261_v36, %v1465_v16  ;;  %v1589_v5 = vld [vmem:[#allocation2 + $0xdc] sm:$0xff] }
  0x54   : > { %v967_v27 = vadd.f32 %v935_v2, %v899_v23  ;;  %v657_v55 = vadd.f32 %v625_v20, %v589_v10  ;;  %v482_v40 = vadd.f32 %v450_v45, %v414_v13  ;;  %v936_v25 = vmul.f32 %v1304_v62, %v1555_v34  ;;  %v1579_v2 = vld [vmem:[#allocation2 + $0xcc] sm:$0xff]  ;;  %v1591_v51 = vld [vmem:[#allocation2 + $0xe2] sm:$0xff] }
  0x55   : > { %v900_v0 = vadd.f32 %v868_v7, %v832_v17  ;;  %v801_v47 = vmul.f32 %v1293_v54, %v1348_v30  ;;  %v626_v32 = vmul.f32 %v1288_v52, %v1461_v9  ;;  %v415_v15 = vadd.f32 %v383_v28, %v315_v26  ;;  %v1593_v7 = vld [vmem:[#allocation2 + $0xf0] sm:$0xff] }
  0x56   : > { %999 = vst.msk [vmem:[%s1396_s24 + $0x38] sm:$0xff] %vm144_vm0, %v967_v27  ;;  %v725_v42 = vadd.f32 %v693_v63, %v657_v55  ;;  %v590_v38 = vadd.f32 %v558_v3, %v482_v40  ;;  %v451_v49 = vmul.f32 %v1274_v44, %v1563_v18  ;;  %v869_v12 = vmul.f32 %v1298_v57, %v1459_v8 }
  0x57   : > { %v968_v61 = vadd.f32 %v936_v25, %v900_v0  ;;  %v694_v30 = vmul.f32 %v1290_v53, %v1567_v41  ;;  %v559_v56 = vmul.f32 %v1282_v48, %v1382_v24  ;;  %v316_v20 = vmul.f32 %v1252_v31, %v1369_v4  ;;  %v1617_v25 = vld [vmem:[#allocation2 + $0xf8] sm:$0xff] }
  0x58   : > { %v833_v60 = vadd.f32 %v801_v47, %v725_v42  ;;  %v658_v19 = vadd.f32 %v626_v32, %v590_v38  ;;  %v483_v46 = vadd.f32 %v451_v49, %v415_v15  ;;  %v937_v23 = vmul.f32 %v1304_v62, %v1579_v2  ;;  %v1623_v38 = vld [vmem:[#allocation2 + $0xf2] sm:$0xff] }
  0x59   : > { %1000 = vst.msk [vmem:[%s1396_s24 + $0x40] sm:$0xff] %vm144_vm0, %v968_v61  ;;  %v802_v24 = vmul.f32 %v1293_v54, %v1398_v35  ;;  %v870_v10 = vmul.f32 %v1298_v57, %v1489_v43  ;;  %v384_v13 = vmul.f32 %v1261_v36, %v1487_v33  ;;  %v627_v4 = vmul.f32 %v1288_v52, %v1501_v1  ;;  %v1613_v35 = vld [vmem:[#allocation2 + $0xe4] sm:$0xff] }
  0x5a   : > { %v901_v45 = vadd.f32 %v869_v12, %v833_v60  ;;  %v726_v17 = vadd.f32 %v694_v30, %v658_v19  ;;  %v591_v63 = vadd.f32 %v559_v56, %v483_v46  ;;  %v938_v3 = vmul.f32 %v1304_v62, %v1589_v5 }
  0x5b   : > { %v695_v26 = vmul.f32 %v1290_v53, %v1591_v51  ;;  %v416_v27 = vadd.f32 %v384_v13, %v316_v20  ;;  %v452_v55 = vmul.f32 %v1274_v44, %v1593_v7  ;;  %v317_v47 = vmul.f32 %v1252_v31, %v1410_v6 }
  0x5c   : > { %v969_v40 = vadd.f32 %v937_v23, %v901_v45  ;;  %v834_v28 = vadd.f32 %v802_v24, %v726_v17  ;;  %v659_v0 = vadd.f32 %v627_v4, %v591_v63  ;;  %v803_v32 = vmul.f32 %v1293_v54, %v1423_v22  ;;  %v1641_v23 = vld [vmem:[#allocation2 + $0x108] sm:$0xff]  ;;  %v1645_v45 = vld [vmem:[#allocation2 + $0xfa] sm:$0xff] }
  0x5d   : > { %v484_v42 = vadd.f32 %v452_v55, %v416_v27  ;;  %v560_v15 = vmul.f32 %v1282_v48, %v1404_v58  ;;  %v385_v49 = vmul.f32 %v1261_v36, %v1513_v21  ;;  %v871_v30 = vmul.f32 %v1298_v57, %v1511_v14  ;;  %v1659_v55 = vld [vmem:[#allocation2 + $0xf4] sm:$0xff] }
  0x5e   : > { %1001 = vst.msk [vmem:[%s1396_s24 + $0x48] sm:$0xff] %vm144_vm0, %v969_v40  ;;  %v902_v61 = vadd.f32 %v870_v10, %v834_v28  ;;  %v727_v12 = vadd.f32 %v695_v26, %v659_v0  ;;  %v939_v6 = vmul.f32 %v1304_v62, %v1613_v35  ;;  %v628_v56 = vmul.f32 %v1288_v52, %v1521_v59  ;;  %v1663_v0 = vld [vmem:[#allocation2 + $0x110] sm:$0xff] }
  0x5f   : > { %v592_v22 = vadd.f32 %v560_v15, %v484_v42  ;;  %v417_v60 = vadd.f32 %v385_v49, %v317_v47  ;;  %v453_v58 = vmul.f32 %v1274_v44, %v1617_v25  ;;  %v696_v20 = vmul.f32 %v1290_v53, %v1623_v38 }
  0x60   : > { %v970_v19 = vadd.f32 %v938_v3, %v902_v61  ;;  %v835_v46 = vadd.f32 %v803_v32, %v727_v12  ;;  %v318_v24 = vmul.f32 %v1252_v31, %v1435_v11  ;;  %v561_v17 = vmul.f32 %v1282_v48, %v1439_v39  ;;  %v1671_v12 = vld [vmem:[#allocation2 + $0x10a] sm:$0xff] }
  0x61   : > { %v660_v10 = vadd.f32 %v628_v56, %v592_v22  ;;  %v485_v13 = vadd.f32 %v453_v58, %v417_v60  ;;  %v386_v63 = vmul.f32 %v1261_v36, %v1537_v50  ;;  %v804_v3 = vmul.f32 %v1293_v54, %v1437_v29  ;;  %v1685_v58 = vld [vmem:[#allocation2 + $0xfc] sm:$0xff] }
  0x62   : > { %1002 = vst.msk [vmem:[%s1396_s24 + $0x50] sm:$0xff] %vm144_vm0, %v970_v19  ;;  %v903_v4 = vadd.f32 %v871_v30, %v835_v46  ;;  %v872_v26 = vmul.f32 %v1298_v57, %v1555_v34  ;;  %v629_v11 = vmul.f32 %v1288_v52, %v1541_v37  ;;  %v454_v28 = vmul.f32 %v1274_v44, %v1641_v23 }
  0x63   : > { %v728_v27 = vadd.f32 %v696_v20, %v660_v10  ;;  %v593_v39 = vadd.f32 %v561_v17, %v485_v13  ;;  %v418_v40 = vadd.f32 %v386_v63, %v318_v24  ;;  %v697_v29 = vmul.f32 %v1290_v53, %v1645_v45 }
  0x64   : > { %v971_v47 = vadd.f32 %v939_v6, %v903_v4  ;;  %v562_v32 = vmul.f32 %v1282_v48, %v1461_v9  ;;  %v319_v42 = vmul.f32 %v1252_v31, %v1465_v16  ;;  %v387_v30 = vmul.f32 %v1261_v36, %v1563_v18  ;;  %v1695_v4 = vld [vmem:[#allocation2 + $0x10c] sm:$0xff] }
  0x65   : > { %v836_v15 = vadd.f32 %v804_v3, %v728_v27  ;;  %v661_v49 = vadd.f32 %v629_v11, %v593_v39  ;;  %v486_v61 = vadd.f32 %v454_v28, %v418_v40  ;;  %v940_v6 = vmul.f32 %v1304_v62, %v1659_v55  ;;  %v1699_v11 = vld [vmem:[#allocation2 + $0x120] sm:$0xff] }
  0x66   : > { %1003 = vst.msk [vmem:[%s1396_s24 + $0x58] sm:$0xff] %vm144_vm0, %v971_v47  ;;  %v805_v22 = vmul.f32 %v1293_v54, %v1459_v8  ;;  %v630_v9 = vmul.f32 %v1288_v52, %v1567_v41  ;;  %v455_v16 = vmul.f32 %v1274_v44, %v1663_v0  ;;  %v419_v46 = vadd.f32 %v387_v30, %v319_v42  ;;  %v1717_v42 = vld [vmem:[#allocation2 + $0x114] sm:$0xff] }
  0x67   : > { %v904_v56 = vadd.f32 %v872_v26, %v836_v15  ;;  %v729_v60 = vadd.f32 %v697_v29, %v661_v49  ;;  %v594_v19 = vadd.f32 %v562_v32, %v486_v61  ;;  %v873_v20 = vmul.f32 %v1298_v57, %v1579_v2  ;;  %v1697_v26 = vld [vmem:[#allocation2 + $0x112] sm:$0xff] }
  0x68   : > { %v698_v24 = vmul.f32 %v1290_v53, %v1671_v12  ;;  %v563_v8 = vmul.f32 %v1282_v48, %v1501_v1  ;;  %v320_v10 = vmul.f32 %v1252_v31, %v1487_v33  ;;  %v487_v3 = vadd.f32 %v455_v16, %v419_v46 }
  0x69   : > { %v972_v13 = vadd.f32 %v940_v6, %v904_v56  ;;  %v837_v17 = vadd.f32 %v805_v22, %v729_v60  ;;  %v662_v63 = vadd.f32 %v630_v9, %v594_v19  ;;  %v941_v27 = vmul.f32 %v1304_v62, %v1685_v58  ;;  %v1721_v22 = vld [vmem:[#allocation2 + $0x128] sm:$0xff] }
  0x6a   : > { %v806_v39 = vmul.f32 %v1293_v54, %v1489_v43  ;;  %v874_v1 = vmul.f32 %v1298_v57, %v1589_v5  ;;  %v388_v33 = vmul.f32 %v1261_v36, %v1593_v7  ;;  %v595_v47 = vadd.f32 %v563_v8, %v487_v3  ;;  %v1727_v60 = vld [vmem:[#allocation2 + $0x122] sm:$0xff] }
  0x6b   : > { %1004 = vst.msk [vmem:[%s1396_s24 + $0x60] sm:$0xff] %vm144_vm0, %v972_v13  ;;  %v905_v40 = vadd.f32 %v873_v20, %v837_v17  ;;  %v730_v28 = vadd.f32 %v698_v24, %v662_v63  ;;  %v631_v29 = vmul.f32 %v1288_v52, %v1591_v51  ;;  %v942_v32 = vmul.f32 %v1304_v62, %v1695_v4 }
  0x6c   : > { %v699_v43 = vmul.f32 %v1290_v53, %v1697_v26  ;;  %v420_v15 = vadd.f32 %v388_v33, %v320_v10  ;;  %v456_v49 = vmul.f32 %v1274_v44, %v1699_v11  ;;  %v321_v9 = vmul.f32 %v1252_v31, %v1513_v21 }
  0x6d   : > { %v973_v61 = vadd.f32 %v941_v27, %v905_v40  ;;  %v838_v30 = vadd.f32 %v806_v39, %v730_v28  ;;  %v663_v6 = vadd.f32 %v631_v29, %v595_v47  ;;  %v807_v16 = vmul.f32 %v1293_v54, %v1511_v14  ;;  %v1745_v27 = vld [vmem:[#allocation2 + $0x138] sm:$0xff]  ;;  %v1749_v40 = vld [vmem:[#allocation2 + $0x12a] sm:$0xff] }
  0x6e   : > { %v488_v56 = vadd.f32 %v456_v49, %v420_v15  ;;  %v564_v19 = vmul.f32 %v1282_v48, %v1521_v59  ;;  %v389_v46 = vmul.f32 %v1261_v36, %v1617_v25  ;;  %v875_v8 = vmul.f32 %v1298_v57, %v1613_v35  ;;  %v1763_v49 = vld [vmem:[#allocation2 + $0x124] sm:$0xff] }
  0x6f   : > { %1005 = vst.msk [vmem:[%s1396_s24 + $0x68] sm:$0xff] %vm144_vm0, %v973_v61  ;;  %v906_v20 = vadd.f32 %v874_v1, %v838_v30  ;;  %v731_v24 = vadd.f32 %v699_v43, %v663_v6  ;;  %v943_v14 = vmul.f32 %v1304_v62, %v1717_v42  ;;  %v632_v10 = vmul.f32 %v1288_v52, %v1623_v38  ;;  %v1767_v6 = vld [vmem:[#allocation2 + $0x140] sm:$0xff] }
  0x70   : > { %v596_v21 = vadd.f32 %v564_v19, %v488_v56  ;;  %v421_v13 = vadd.f32 %v389_v46, %v321_v9  ;;  %v457_v59 = vmul.f32 %v1274_v44, %v1721_v22  ;;  %v700_v3 = vmul.f32 %v1290_v53, %v1727_v60 }
  0x71   : > { %v974_v17 = vadd.f32 %v942_v32, %v906_v20  ;;  %v839_v63 = vadd.f32 %v807_v16, %v731_v24  ;;  %v322_v39 = vmul.f32 %v1252_v31, %v1537_v50  ;;  %v565_v28 = vmul.f32 %v1282_v48, %v1541_v37  ;;  %v1775_v24 = vld [vmem:[#allocation2 + $0x13a] sm:$0xff] }
  0x72   : > { %v664_v1 = vadd.f32 %v632_v10, %v596_v21  ;;  %v489_v33 = vadd.f32 %v457_v59, %v421_v13  ;;  %v390_v47 = vmul.f32 %v1261_v36, %v1641_v23  ;;  %v808_v32 = vmul.f32 %v1293_v54, %v1555_v34  ;;  %v1789_v59 = vld [vmem:[#allocation2 + $0x12c] sm:$0xff] }
  0x73   : > { %1006 = vst.msk [vmem:[%s1396_s24 + $0x70] sm:$0xff] %vm144_vm0, %v974_v17  ;;  %v907_v29 = vadd.f32 %v875_v8, %v839_v63  ;;  %v876_v43 = vmul.f32 %v1298_v57, %v1659_v55  ;;  %v633_v50 = vmul.f32 %v1288_v52, %v1645_v45  ;;  %v458_v30 = vmul.f32 %v1274_v44, %v1745_v27 }
  0x74   : > { %v732_v15 = vadd.f32 %v700_v3, %v664_v1  ;;  %v597_v37 = vadd.f32 %v565_v28, %v489_v33  ;;  %v422_v61 = vadd.f32 %v390_v47, %v322_v39  ;;  %v701_v34 = vmul.f32 %v1290_v53, %v1749_v40 }
  0x75   : > { %v975_v9 = vadd.f32 %v943_v14, %v907_v29  ;;  %v566_v16 = vmul.f32 %v1282_v48, %v1567_v41  ;;  %v323_v56 = vmul.f32 %v1252_v31, %v1563_v18  ;;  %v391_v8 = vmul.f32 %v1261_v36, %v1663_v0  ;;  %v1799_v29 = vld [vmem:[#allocation2 + $0x13c] sm:$0xff] }
  0x76   : > { %v840_v19 = vadd.f32 %v808_v32, %v732_v15  ;;  %v665_v46 = vadd.f32 %v633_v50, %v597_v37  ;;  %v490_v20 = vadd.f32 %v458_v30, %v422_v61  ;;  %v944_v14 = vmul.f32 %v1304_v62, %v1763_v49  ;;  %v1803_v50 = vld [vmem:[#allocation2 + $0x150] sm:$0xff] }
  0x77   : > { %1007 = vst.msk [vmem:[%s1396_s24 + $0x78] sm:$0xff] %vm144_vm0, %v975_v9  ;;  %v809_v21 = vmul.f32 %v1293_v54, %v1579_v2  ;;  %v634_v41 = vmul.f32 %v1288_v52, %v1671_v12  ;;  %v459_v18 = vmul.f32 %v1274_v44, %v1767_v6  ;;  %v423_v63 = vadd.f32 %v391_v8, %v323_v56  ;;  %v1821_v56 = vld [vmem:[#allocation2 + $0x144] sm:$0xff] }
  0x78   : > { %v908_v10 = vadd.f32 %v876_v43, %v840_v19  ;;  %v733_v13 = vadd.f32 %v701_v34, %v665_v46  ;;  %v598_v17 = vadd.f32 %v566_v16, %v490_v20  ;;  %v877_v3 = vmul.f32 %v1298_v57, %v1685_v58  ;;  %v1801_v43 = vld [vmem:[#allocation2 + $0x142] sm:$0xff] }
  0x79   : > { %v702_v39 = vmul.f32 %v1290_v53, %v1775_v24  ;;  %v567_v2 = vmul.f32 %v1282_v48, %v1591_v51  ;;  %v324_v1 = vmul.f32 %v1252_v31, %v1593_v7  ;;  %v491_v32 = vadd.f32 %v459_v18, %v423_v63 }
  0x7a   : > { %v976_v33 = vadd.f32 %v944_v14, %v908_v10  ;;  %v841_v28 = vadd.f32 %v809_v21, %v733_v13  ;;  %v666_v47 = vadd.f32 %v634_v41, %v598_v17  ;;  %v945_v15 = vmul.f32 %v1304_v62, %v1789_v59  ;;  %v1825_v21 = vld [vmem:[#allocation2 + $0x158] sm:$0xff] }
  0x7b   : > { %v810_v37 = vmul.f32 %v1293_v54, %v1589_v5  ;;  %v878_v51 = vmul.f32 %v1298_v57, %v1695_v4  ;;  %v392_v7 = vmul.f32 %v1261_v36, %v1699_v11  ;;  %v599_v9 = vadd.f32 %v567_v2, %v491_v32  ;;  %v1831_v13 = vld [vmem:[#allocation2 + $0x152] sm:$0xff] }
  0x7c   : > { %1008 = vst.msk [vmem:[%s1396_s24 + $0x80] sm:$0xff] %vm144_vm0, %v976_v33  ;;  %v909_v61 = vadd.f32 %v877_v3, %v841_v28  ;;  %v734_v30 = vadd.f32 %v702_v39, %v666_v47  ;;  %v635_v34 = vmul.f32 %v1288_v52, %v1697_v26  ;;  %v946_v16 = vmul.f32 %v1304_v62, %v1799_v29 }
  0x7d   : > { %v703_v5 = vmul.f32 %v1290_v53, %v1801_v43  ;;  %v424_v19 = vadd.f32 %v392_v7, %v324_v1  ;;  %v460_v46 = vmul.f32 %v1274_v44, %v1803_v50  ;;  %v325_v41 = vmul.f32 %v1252_v31, %v1617_v25 }
  0x7e   : > { %v977_v20 = vadd.f32 %v945_v15, %v909_v61  ;;  %v842_v8 = vadd.f32 %v810_v37, %v734_v30  ;;  %v667_v14 = vadd.f32 %v635_v34, %v599_v9  ;;  %v811_v18 = vmul.f32 %v1293_v54, %v1613_v35  ;;  %v1849_v15 = vld [vmem:[#allocation2 + $0x168] sm:$0xff]  ;;  %v1853_v61 = vld [vmem:[#allocation2 + $0x15a] sm:$0xff] }
  0x7f   : > { %v492_v10 = vadd.f32 %v460_v46, %v424_v19  ;;  %v568_v17 = vmul.f32 %v1282_v48, %v1623_v38  ;;  %v393_v63 = vmul.f32 %v1261_v36, %v1721_v22  ;;  %v879_v2 = vmul.f32 %v1298_v57, %v1717_v42  ;;  %v1867_v46 = vld [vmem:[#allocation2 + $0x154] sm:$0xff] }
  0x80   : > { %1009 = vst.msk [vmem:[%s1396_s24 + $0x88] sm:$0xff] %vm144_vm0, %v977_v20  ;;  %v910_v3 = vadd.f32 %v878_v51, %v842_v8  ;;  %v735_v39 = vadd.f32 %v703_v5, %v667_v14  ;;  %v947_v35 = vmul.f32 %v1304_v62, %v1821_v56  ;;  %v636_v1 = vmul.f32 %v1288_v52, %v1727_v60  ;;  %v1871_v14 = vld [vmem:[#allocation2 + $0x170] sm:$0xff] }
  0x81   : > { %v600_v25 = vadd.f32 %v568_v17, %v492_v10  ;;  %v425_v33 = vadd.f32 %v393_v63, %v325_v41  ;;  %v461_v38 = vmul.f32 %v1274_v44, %v1825_v21  ;;  %v704_v32 = vmul.f32 %v1290_v53, %v1831_v13 }
  0x82   : > { %v978_v28 = vadd.f32 %v946_v16, %v910_v3  ;;  %v843_v47 = vadd.f32 %v811_v18, %v735_v39  ;;  %v326_v37 = vmul.f32 %v1252_v31, %v1641_v23  ;;  %v569_v30 = vmul.f32 %v1282_v48, %v1645_v45  ;;  %v1879_v39 = vld [vmem:[#allocation2 + $0x16a] sm:$0xff] }
  0x83   : > { %v668_v51 = vadd.f32 %v636_v1, %v600_v25  ;;  %v493_v7 = vadd.f32 %v461_v38, %v425_v33  ;;  %v394_v9 = vmul.f32 %v1261_v36, %v1745_v27  ;;  %v812_v16 = vmul.f32 %v1293_v54, %v1659_v55  ;;  %v1893_v38 = vld [vmem:[#allocation2 + $0x15c] sm:$0xff] }
  0x84   : > { %1010 = vst.msk [vmem:[%s1396_s24 + $0x90] sm:$0xff] %vm144_vm0, %v978_v28  ;;  %v911_v34 = vadd.f32 %v879_v2, %v843_v47  ;;  %v880_v5 = vmul.f32 %v1298_v57, %v1763_v49  ;;  %v637_v23 = vmul.f32 %v1288_v52, %v1749_v40  ;;  %v462_v8 = vmul.f32 %v1274_v44, %v1849_v15 }
  0x85   : > { %v736_v19 = vadd.f32 %v704_v32, %v668_v51  ;;  %v601_v45 = vadd.f32 %v569_v30, %v493_v7  ;;  %v426_v20 = vadd.f32 %v394_v9, %v326_v37  ;;  %v705_v55 = vmul.f32 %v1290_v53, %v1853_v61 }
  0x86   : > { %v979_v41 = vadd.f32 %v947_v35, %v911_v34  ;;  %v570_v18 = vmul.f32 %v1282_v48, %v1671_v12  ;;  %v327_v10 = vmul.f32 %v1252_v31, %v1663_v0  ;;  %v395_v2 = vmul.f32 %v1261_v36, %v1767_v6  ;;  %v1903_v34 = vld [vmem:[#allocation2 + $0x16c] sm:$0xff] }
  0x87   : > { %v844_v17 = vadd.f32 %v812_v16, %v736_v19  ;;  %v669_v63 = vadd.f32 %v637_v23, %v601_v45  ;;  %v494_v3 = vadd.f32 %v462_v8, %v426_v20  ;;  %v948_v35 = vmul.f32 %v1304_v62, %v1867_v46  ;;  %v1907_v23 = vld [vmem:[#allocation2 + $0x180] sm:$0xff] }
  0x88   : > { %1011 = vst.msk [vmem:[%s1396_s24 + $0x98] sm:$0xff] %vm144_vm0, %v979_v41  ;;  %v813_v25 = vmul.f32 %v1293_v54, %v1685_v58  ;;  %v638_v12 = vmul.f32 %v1288_v52, %v1775_v24  ;;  %v463_v0 = vmul.f32 %v1274_v44, %v1871_v14  ;;  %v427_v47 = vadd.f32 %v395_v2, %v327_v10  ;;  %v1925_v10 = vld [vmem:[#allocation2 + $0x174] sm:$0xff] }
  0x89   : > { %v912_v1 = vadd.f32 %v880_v5, %v844_v17  ;;  %v737_v33 = vadd.f32 %v705_v55, %v669_v63  ;;  %v602_v28 = vadd.f32 %v570_v18, %v494_v3  ;;  %v881_v32 = vmul.f32 %v1298_v57, %v1789_v59  ;;  %v1905_v5 = vld [vmem:[#allocation2 + $0x172] sm:$0xff] }
  0x8a   : > { %v706_v37 = vmul.f32 %v1290_v53, %v1879_v39  ;;  %v571_v58 = vmul.f32 %v1282_v48, %v1697_v26  ;;  %v328_v51 = vmul.f32 %v1252_v31, %v1699_v11  ;;  %v495_v16 = vadd.f32 %v463_v0, %v427_v47 }
  0x8b   : > { %v980_v7 = vadd.f32 %v948_v35, %v912_v1  ;;  %v845_v30 = vadd.f32 %v813_v25, %v737_v33  ;;  %v670_v9 = vadd.f32 %v638_v12, %v602_v28  ;;  %v949_v19 = vmul.f32 %v1304_v62, %v1893_v38  ;;  %v1929_v25 = vld [vmem:[#allocation2 + $0x188] sm:$0xff] }
  0x8c   : > { %v814_v45 = vmul.f32 %v1293_v54, %v1695_v4  ;;  %v882_v26 = vmul.f32 %v1298_v57, %v1799_v29  ;;  %v396_v11 = vmul.f32 %v1261_v36, %v1803_v50  ;;  %v603_v41 = vadd.f32 %v571_v58, %v495_v16  ;;  %v1935_v33 = vld [vmem:[#allocation2 + $0x182] sm:$0xff] }
  0x8d   : > { %1012 = vst.msk [vmem:[%s1396_s24 + $0xa0] sm:$0xff] %vm144_vm0, %v980_v7  ;;  %v913_v20 = vadd.f32 %v881_v32, %v845_v30  ;;  %v738_v8 = vadd.f32 %v706_v37, %v670_v9  ;;  %v639_v55 = vmul.f32 %v1288_v52, %v1801_v43  ;;  %v950_v18 = vmul.f32 %v1304_v62, %v1903_v34 }
  0x8e   : > { %v707_v4 = vmul.f32 %v1290_v53, %v1905_v5  ;;  %v428_v17 = vadd.f32 %v396_v11, %v328_v51  ;;  %v464_v63 = vmul.f32 %v1274_v44, %v1907_v23  ;;  %v329_v12 = vmul.f32 %v1252_v31, %v1721_v22 }
  0x8f   : > { %v981_v3 = vadd.f32 %v949_v19, %v913_v20  ;;  %v846_v2 = vadd.f32 %v814_v45, %v738_v8  ;;  %v671_v35 = vadd.f32 %v639_v55, %v603_v41  ;;  %v815_v0 = vmul.f32 %v1293_v54, %v1717_v42  ;;  %v1953_v19 = vld [vmem:[#allocation2 + $0x198] sm:$0xff]  ;;  %v1957_v20 = vld [vmem:[#allocation2 + $0x18a] sm:$0xff] }
  0x90   : > { %v496_v1 = vadd.f32 %v464_v63, %v428_v17  ;;  %v572_v28 = vmul.f32 %v1282_v48, %v1727_v60  ;;  %v397_v47 = vmul.f32 %v1261_v36, %v1825_v21  ;;  %v883_v58 = vmul.f32 %v1298_v57, %v1821_v56  ;;  %v1971_v63 = vld [vmem:[#allocation2 + $0x184] sm:$0xff] }
  0x91   : > { %1013 = vst.msk [vmem:[%s1396_s24 + $0xa8] sm:$0xff] %vm144_vm0, %v981_v3  ;;  %v914_v32 = vadd.f32 %v882_v26, %v846_v2  ;;  %v739_v37 = vadd.f32 %v707_v4, %v671_v35  ;;  %v951_v42 = vmul.f32 %v1304_v62, %v1925_v10  ;;  %v640_v51 = vmul.f32 %v1288_v52, %v1831_v13  ;;  %v1975_v35 = vld [vmem:[#allocation2 + $0x1a0] sm:$0xff] }
  0x92   : > { %v604_v22 = vadd.f32 %v572_v28, %v496_v1  ;;  %v429_v7 = vadd.f32 %v397_v47, %v329_v12  ;;  %v465_v60 = vmul.f32 %v1274_v44, %v1929_v25  ;;  %v708_v16 = vmul.f32 %v1290_v53, %v1935_v33 }
  0x93   : > { %v982_v30 = vadd.f32 %v950_v18, %v914_v32  ;;  %v847_v9 = vadd.f32 %v815_v0, %v739_v37  ;;  %v330_v45 = vmul.f32 %v1252_v31, %v1745_v27  ;;  %v573_v8 = vmul.f32 %v1282_v48, %v1749_v40  ;;  %v1983_v37 = vld [vmem:[#allocation2 + $0x19a] sm:$0xff] }
  0x94   : > { %v672_v26 = vadd.f32 %v640_v51, %v604_v22  ;;  %v497_v11 = vadd.f32 %v465_v60, %v429_v7  ;;  %v398_v41 = vmul.f32 %v1261_v36, %v1849_v15  ;;  %v816_v18 = vmul.f32 %v1293_v54, %v1763_v49  ;;  %v1997_v60 = vld [vmem:[#allocation2 + $0x18c] sm:$0xff] }
  0x95   : > { %1014 = vst.msk [vmem:[%s1396_s24 + $0xb0] sm:$0xff] %vm144_vm0, %v982_v30  ;;  %v915_v55 = vadd.f32 %v883_v58, %v847_v9  ;;  %v884_v4 = vmul.f32 %v1298_v57, %v1867_v46  ;;  %v641_v27 = vmul.f32 %v1288_v52, %v1853_v61  ;;  %v466_v2 = vmul.f32 %v1274_v44, %v1953_v19 }
  0x96   : > { %v740_v17 = vadd.f32 %v708_v16, %v672_v26  ;;  %v605_v40 = vadd.f32 %v573_v8, %v497_v11  ;;  %v430_v3 = vadd.f32 %v398_v41, %v330_v45  ;;  %v709_v49 = vmul.f32 %v1290_v53, %v1957_v20  ;;  %v296_v16 = vld [vmem:[#allocation2 + $0x1b0] sm:$0xff] }
  0x97   : > { %v983_v12 = vadd.f32 %v951_v42, %v915_v55  ;;  %v574_v0 = vmul.f32 %v1282_v48, %v1775_v24  ;;  %v331_v1 = vmul.f32 %v1252_v31, %v1767_v6  ;;  %v399_v58 = vmul.f32 %v1261_v36, %v1871_v14 }
  0x98   : > { %v848_v28 = vadd.f32 %v816_v18, %v740_v17  ;;  %v673_v47 = vadd.f32 %v641_v27, %v605_v40  ;;  %v498_v32 = vadd.f32 %v466_v2, %v430_v3  ;;  %v952_v42 = vmul.f32 %v1304_v62, %v1971_v63  ;;  %v2007_v18 = vld [vmem:[#allocation2 + $0x19c] sm:$0xff] }
  0x99   : > { %1015 = vst.msk [vmem:[%s1396_s24 + $0xb8] sm:$0xff] %vm144_vm0, %v983_v12  ;;  %v817_v22 = vmul.f32 %v1293_v54, %v1789_v59  ;;  %v642_v24 = vmul.f32 %v1288_v52, %v1879_v39  ;;  %v467_v6 = vmul.f32 %v1274_v44, %v1975_v35  ;;  %v431_v9 = vadd.f32 %v399_v58, %v331_v1  ;;  %v2009_v27 = vld [vmem:[#allocation2 + $0x1a2] sm:$0xff] }
  0x9a   : > { %v916_v51 = vadd.f32 %v884_v4, %v848_v28  ;;  %v741_v7 = vadd.f32 %v709_v49, %v673_v47  ;;  %v606_v30 = vadd.f32 %v574_v0, %v498_v32  ;;  %v885_v45 = vmul.f32 %v1298_v57, %v1893_v38  ;;  %v297_v0 = vld [vmem:[#allocation2 + $0x1b8] sm:$0xff] }
  0x9b   : > { %v710_v59 = vmul.f32 %v1290_v53, %v1983_v37  ;;  %v575_v26 = vmul.f32 %v1282_v48, %v1801_v43  ;;  %v332_v11 = vmul.f32 %v1252_v31, %v1803_v50  ;;  %v499_v4 = vadd.f32 %v467_v6, %v431_v9 }
  0x9c   : > { %v984_v8 = vadd.f32 %v952_v42, %v916_v51  ;;  %v849_v41 = vadd.f32 %v817_v22, %v741_v7  ;;  %v674_v55 = vadd.f32 %v642_v24, %v606_v30  ;;  %v953_v17 = vmul.f32 %v1304_v62, %v1997_v60  ;;  %v540_v42 = vld [vmem:[#allocation2 + $0x1b2] sm:$0xff] }
  0x9d   : > { %v818_v40 = vmul.f32 %v1293_v54, %v1799_v29  ;;  %v400_v43 = vmul.f32 %v1261_v36, %v1907_v23  ;;  %v468_v3 = vmul.f32 %v1274_v44, %v296_v16  ;;  %v607_v12 = vadd.f32 %v575_v26, %v499_v4 }
  0x9e   : > { %1016 = vst.msk [vmem:[%s1396_s24 + $0xc0] sm:$0xff] %vm144_vm0, %v984_v8  ;;  %v917_v50 = vadd.f32 %v885_v45, %v849_v41  ;;  %v742_v2 = vadd.f32 %v710_v59, %v674_v55  ;;  %v643_v49 = vmul.f32 %v1288_v52, %v1905_v5  ;;  %v886_v1 = vmul.f32 %v1298_v57, %v1903_v34  ;;  %v2041_v59 = vld [vmem:[#allocation2 + $0x1a4] sm:$0xff] }
  0x9f   : > { %v954_v29 = vmul.f32 %v1304_v62, %v2007_v18  ;;  %v711_v23 = vmul.f32 %v1290_v53, %v2009_v27  ;;  %v432_v28 = vadd.f32 %v400_v43, %v332_v11  ;;  %v333_v22 = vmul.f32 %v1252_v31, %v1825_v21  ;;  %v298_v21 = vld [vmem:[#allocation2 + $0x1c8] sm:$0xff] }
  0xa0   : > { %v985_v47 = vadd.f32 %v953_v17, %v917_v50  ;;  %v850_v32 = vadd.f32 %v818_v40, %v742_v2  ;;  %v675_v58 = vadd.f32 %v643_v49, %v607_v12  ;;  %v576_v6 = vmul.f32 %v1282_v48, %v1831_v13  ;;  %v541_v40 = vld [vmem:[#allocation2 + $0x1ba] sm:$0xff] }
  0xa1   : > { %v500_v24 = vadd.f32 %v468_v3, %v432_v28  ;;  %v401_v51 = vmul.f32 %v1261_v36, %v1929_v25  ;;  %v469_v7 = vmul.f32 %v1274_v44, %v297_v0  ;;  %v819_v16 = vmul.f32 %v1293_v54, %v1821_v56  ;;  %v784_v12 = vld [vmem:[#allocation2 + $0x1b4] sm:$0xff] }
  0xa2   : > { %1017 = vst.msk [vmem:[%s1396_s24 + $0xc8] sm:$0xff] %vm144_vm0, %v985_v47  ;;  %v918_v30 = vadd.f32 %v886_v1, %v850_v32  ;;  %v743_v9 = vadd.f32 %v711_v23, %v675_v58  ;;  %v887_v45 = vmul.f32 %v1298_v57, %v1925_v10  ;;  %v644_v25 = vmul.f32 %v1288_v52, %v1935_v33  ;;  %v299_v1 = vld [vmem:[#allocation2 + $0x1d0] sm:$0xff] }
  0xa3   : > { %v608_v13 = vadd.f32 %v576_v6, %v500_v24  ;;  %v712_v26 = vmul.f32 %v1290_v53, %v540_v42  ;;  %v433_v11 = vadd.f32 %v401_v51, %v333_v22  ;;  %v577_v55 = vmul.f32 %v1282_v48, %v1853_v61  ;;  %v542_v58 = vld [vmem:[#allocation2 + $0x1ca] sm:$0xff]  ;;  %v785_v6 = vld [vmem:[#allocation2 + $0x1bc] sm:$0xff] }
  0xa4   : > { %v986_v8 = vadd.f32 %v954_v29, %v918_v30  ;;  %v851_v41 = vadd.f32 %v819_v16, %v743_v9  ;;  %v334_v56 = vmul.f32 %v1252_v31, %v1849_v15  ;;  %v402_v43 = vmul.f32 %v1261_v36, %v1953_v19 }
  0xa5   : > { %v676_v4 = vadd.f32 %v644_v25, %v608_v13  ;;  %v501_v17 = vadd.f32 %v469_v7, %v433_v11  ;;  %v470_v3 = vmul.f32 %v1274_v44, %v298_v21  ;;  %v955_v50 = vmul.f32 %v1304_v62, %v2041_v59  ;;  %v543_v21 = vld [vmem:[#allocation2 + $0x1d2] sm:$0xff] }
  0xa6   : > { %1018 = vst.msk [vmem:[%s1396_s24 + $0xd0] sm:$0xff] %vm144_vm0, %v986_v8  ;;  %v919_v33 = vadd.f32 %v887_v45, %v851_v41  ;;  %v820_v61 = vmul.f32 %v1293_v54, %v1867_v46  ;;  %v888_v15 = vmul.f32 %v1298_v57, %v1971_v63  ;;  %v645_v19 = vmul.f32 %v1288_v52, %v1957_v20 }
  0xa7   : > { %v744_v2 = vadd.f32 %v712_v26, %v676_v4  ;;  %v609_v49 = vadd.f32 %v577_v55, %v501_v17  ;;  %v434_v0 = vadd.f32 %v402_v43, %v334_v56  ;;  %v713_v23 = vmul.f32 %v1290_v53, %v541_v40 }
  0xa8   : > { %v987_v29 = vadd.f32 %v955_v50, %v919_v33  ;;  %v578_v28 = vmul.f32 %v1282_v48, %v1879_v39  ;;  %v335_v46 = vmul.f32 %v1252_v31, %v1871_v14  ;;  %v403_v42 = vmul.f32 %v1261_v36, %v1975_v35 }
  0xa9   : > { %v852_v47 = vadd.f32 %v820_v61, %v744_v2  ;;  %v677_v63 = vadd.f32 %v645_v19, %v609_v49  ;;  %v502_v32 = vadd.f32 %v470_v3, %v434_v0  ;;  %v956_v20 = vmul.f32 %v1304_v62, %v784_v12 }
  0xaa   : > { %1019 = vst.msk [vmem:[%s1396_s24 + $0xd8] sm:$0xff] %vm144_vm0, %v987_v29  ;;  %v821_v22 = vmul.f32 %v1293_v54, %v1893_v38  ;;  %v646_v39 = vmul.f32 %v1288_v52, %v1983_v37  ;;  %v471_v24 = vmul.f32 %v1274_v44, %v299_v1  ;;  %v435_v7 = vadd.f32 %v403_v42, %v335_v46 }
  0xab   : > { %v920_v31 = vadd.f32 %v888_v15, %v852_v47  ;;  %v745_v14 = vadd.f32 %v713_v23, %v677_v63  ;;  %v610_v51 = vadd.f32 %v578_v28, %v502_v32  ;;  %v889_v36 = vmul.f32 %v1298_v57, %v1997_v60 }
  0xac   : > { %v714_v35 = vmul.f32 %v1290_v53, %v542_v58  ;;  %v579_v30 = vmul.f32 %v1282_v48, %v1905_v5  ;;  %v503_v37 = vadd.f32 %v471_v24, %v435_v7  ;;  %v957_v44 = vmul.f32 %v1304_v62, %v785_v6  ;;  %v786_v48 = vld [vmem:[#allocation2 + $0x1cc] sm:$0xff] }
  0xad   : > { %v988_v38 = vadd.f32 %v956_v20, %v920_v31  ;;  %v853_v9 = vadd.f32 %v821_v22, %v745_v14  ;;  %v678_v16 = vadd.f32 %v646_v39, %v610_v51  ;;  %v822_v45 = vmul.f32 %v1293_v54, %v1903_v34 }
  0xae   : > { %v611_v25 = vadd.f32 %v579_v30, %v503_v37  ;;  %v647_v26 = vmul.f32 %v1288_v52, %v2009_v27  ;;  %v890_v5 = vmul.f32 %v1298_v57, %v2007_v18  ;;  %v715_v34 = vmul.f32 %v1290_v53, %v543_v21  ;;  %v787_v27 = vld [vmem:[#allocation2 + $0x1d4] sm:$0xff] }
  0xaf   : > { %1020 = vst.msk [vmem:[%s1396_s24 + $0xe0] sm:$0xff] %vm144_vm0, %v988_v38  ;;  %v921_v13 = vadd.f32 %v889_v36, %v853_v9  ;;  %v746_v60 = vadd.f32 %v714_v35, %v678_v16  ;;  %v958_v56 = vmul.f32 %v1304_v62, %v786_v48  ;;  %v823_v52 = vmul.f32 %v1293_v54, %v1925_v10 }
  0xb0   : > { %v679_v41 = vadd.f32 %v647_v26, %v611_v25  ;;  %v891_v18 = vmul.f32 %v1298_v57, %v2041_v59  ;;  %v959_v53 = vmul.f32 %v1304_v62, %v787_v27 }
  0xb1   : > { %v989_v11 = vadd.f32 %v957_v44, %v921_v13  ;;  %v854_v8 = vadd.f32 %v822_v45, %v746_v60 }
  0xb2   : > { %v747_v4 = vadd.f32 %v715_v34, %v679_v41 }
  0xb3   : > { %1021 = vst.msk [vmem:[%s1396_s24 + $0xe8] sm:$0xff] %vm144_vm0, %v989_v11  ;;  %v922_v55 = vadd.f32 %v890_v5, %v854_v8 }
  0xb4   : > { %v855_v40 = vadd.f32 %v823_v52, %v747_v4 }
  0xb5   : > { %v990_v17 = vadd.f32 %v958_v56, %v922_v55 }
  0xb6   : > { %v923_v43 = vadd.f32 %v891_v18, %v855_v40 }
  0xb7   : > { %1022 = vst.msk [vmem:[%s1396_s24 + $0xf0] sm:$0xff] %vm144_vm0, %v990_v17 }
  0xb8   : > { %v991_v3 = vadd.f32 %v959_v53, %v923_v43 }
  0xba   : > { %1023 = vst.msk [vmem:[%s1396_s24 + $0xf8] sm:$0xff] %vm144_vm0, %v991_v3 }
  0xbb PF: > { %s12_s9 = sadd.s32 1, %s1107_s9  }
  0xbc   : > { %p9_p4 = scmp.ge.s32.totalorder %s12_s9, 4  }
  0xbe   :  { %11 = sbr.rel (!%p9_p4) target bundleno = 1 (0x1), region = 60 }

</bundles_post_ra>
